<compile_context>
chip_gen: v5e
topology: v5e:2x2
jax: 0.10.0
libtpu: 0.0.40
codegen_flags: <defaults>
</compile_context>

<pallas_src>
import functools

import jax
import jax.numpy as jnp
from jax.experimental import pallas as pl
from jax.experimental.pallas import tpu as pltpu


def _round_up(x, m):
    return ((x + m - 1) // m) * m


def _vmem_capacity_bytes():
    """Generation-aware VMEM capacity with a v7x-safe fallback."""
    try:
        info = pltpu.get_tpu_info()
        for attr in ("vmem_capacity_bytes", "vmem_size_bytes", "vmem_bytes"):
            v = getattr(info, attr, None)
            if v:
                return int(v)
    except Exception:
        pass
    return 64 * 1024 * 1024  # v7x per-TC physical VMEM (smallest of v5e/v6e/v7x)


# ----------------------------------------------------------------------------
# Fused GRU layer kernel: input projection + (both directions of) the recurrence.
# Grid iterates over time blocks; hidden state carried in a VMEM scratch.
# ----------------------------------------------------------------------------
def _gru_layer_kernel(*refs, ndir, n_chunks, t_blk, bp, hp, seq_len, seq_pad):
    n_x = ndir * n_chunks
    x_refs = refs[:n_x]
    h0_ref, wih_ref, whh_ref, bih_ref, bhn_ref = refs[n_x:n_x + 5]
    out_refs = refs[n_x + 5:n_x + 5 + ndir]
    hn_ref = refs[n_x + 5 + ndir]
    h_scratch = refs[n_x + 6 + ndir]

    blk = pl.program_id(0)
    nblk = pl.num_programs(0)

    @pl.when(blk == 0)
    def _():
        h_scratch[...] = h0_ref[...].astype(jnp.float32)

    Hp = hp

    # ---- Block prologue: fused input projection (off the h-dependency chain). ----
    # One (t_blk*Bp, Dp) x (Dp, 3Hp) matmul per direction replaces the former gi HBM array.
    gi = []
    for d in range(ndir):
        acc = None
        for c in range(n_chunks):
            x_blk = x_refs[d * n_chunks + c][...]          # (t_blk*Bp, Dp)
            w = wih_ref[d * n_chunks + c]                  # (Dp, 3Hp)
            p = jnp.dot(x_blk, w, preferred_element_type=jnp.float32)
            acc = p if acc is None else acc + p
        gi.append(acc + bih_ref[d])                        # folded bias: b_ih + b_h{r,z}

    whh = [whh_ref[d] for d in range(ndir)]                # (Hp, 3Hp) bf16, VMEM resident
    bhn = [bhn_ref[d] for d in range(ndir)]                # (1, Hp)  f32
    hs = [h_scratch[d * bp:(d + 1) * bp, :] for d in range(ndir)]   # (Bp, Hp) f32

    has_pad = seq_pad != seq_len                           # static
    rem = seq_len - (seq_pad - t_blk)                      # first padded local index

    # Fully unrolled inner time loop: static indices -> unmasked full-tile slices/stores;
    # the fwd and bwd chains are independent, so the LLO scheduler interleaves their
    # MXU / EUP / VPU work.
    for i in range(t_blk):
        for d in range(ndir):
            reverse = (d == 1)
            t_local = (t_blk - 1 - i) if reverse else i
            row0 = t_local * bp
            gi_t = gi[d][row0:row0 + bp, :]                # (Bp, 3Hp) f32
            h = hs[d]

            # Recurrent matmul on the serial critical path: bf16 operands, f32 accumulate.
            gh = jnp.dot(h.astype(jnp.bfloat16), whh[d],
                         preferred_element_type=jnp.float32)

            # Gate slices are whole lane-aligned tiles (offsets 0, Hp, 2Hp; Hp % 128 == 0).
            i_r, i_z, i_n = gi_t[:, :Hp], gi_t[:, Hp:2 * Hp], gi_t[:, 2 * Hp:]
            h_r, h_z = gh[:, :Hp], gh[:, Hp:2 * Hp]
            h_n = gh[:, 2 * Hp:] + bhn[d]                  # b_hn must stay inside r*(...)

            r = jax.nn.sigmoid(i_r + h_r)                  # EUP
            z = jax.nn.sigmoid(i_z + h_z)                  # EUP
            n = jnp.tanh(i_n + r * h_n)                    # EUP + VPU
            h_new = n + z * (h - n)                        # == (1-z)*n + z*h  (all f32)

            if has_pad and t_local >= rem:
                # Freeze h on padded timesteps; only one global block can contain them.
                in_pad_block = blk == (0 if reverse else nblk - 1)
                h_new = jnp.where(in_pad_block, h, h_new)

            out_refs[d][row0:row0 + bp, :] = h_new.astype(out_refs[d].dtype)
            hs[d] = h_new

    for d in range(ndir):
        h_scratch[d * bp:(d + 1) * bp, :] = hs[d]
        hn_ref[d * bp:(d + 1) * bp, :] = hs[d].astype(hn_ref.dtype)


def _gru_layer_call(chunks, h0, prep, *, ndir, seq_len, seq_pad, t_blk, bp,
                    out_dtype, vmem_limit):
    """One GRU layer (both directions fused when ndir == 2).

    chunks: list of layer-input feature chunks, each (seq_pad*Bp, Dp) in stream dtype.
    h0:     (ndir*Bp, Hp) f32.
    Returns ([out_dir0, out_dir1?] each (seq_pad*Bp, Hp), hn (ndir*Bp, Hp) f32).
    """
    hp = prep["Hp"]
    dp = prep["Dp"]
    n_chunks = prep["n_chunks"]
    nblk = seq_pad // t_blk
    rows = seq_pad * bp

    def fwd_map(t):
        return (t, 0)

    def bwd_map(t):
        return (nblk - 1 - t, 0)      # reversed DMA order; no jnp.flip / extra HBM pass

    dir_maps = (fwd_map, bwd_map)
    const2 = lambda t: (0, 0)
    const3 = lambda t: (0, 0, 0)

    x_args, x_specs = [], []
    for d in range(ndir):
        for c in range(n_chunks):
            x_args.append(chunks[c])
            x_specs.append(pl.BlockSpec((t_blk * bp, dp), dir_maps[d]))

    in_specs = x_specs + [
        pl.BlockSpec((ndir * bp, hp), const2),                 # h0
        pl.BlockSpec((ndir * n_chunks, dp, 3 * hp), const3),   # W_ih^T (gate-offset)
        pl.BlockSpec((ndir, hp, 3 * hp), const3),              # W_hh^T bf16 (resident)
        pl.BlockSpec((ndir, 1, 3 * hp), const3),               # folded bias (b_ih + b_h{r,z})
        pl.BlockSpec((ndir, 1, hp), const3),                   # b_hn
    ]
    out_specs = tuple(
        [pl.BlockSpec((t_blk * bp, hp), dir_maps[d]) for d in range(ndir)]
        + [pl.BlockSpec((ndir * bp, hp), const2)]              # hn, written every block
    )
    out_shape = tuple(
        [jax.ShapeDtypeStruct((rows, hp), out_dtype) for _ in range(ndir)]
        + [jax.ShapeDtypeStruct((ndir * bp, hp), jnp.float32)]
    )

    kernel = functools.partial(
        _gru_layer_kernel, ndir=ndir, n_chunks=n_chunks, t_blk=t_blk, bp=bp,
        hp=hp, seq_len=seq_len, seq_pad=seq_pad)

    results = pl.pallas_call(
        kernel,
        out_shape=out_shape,
        grid_spec=pltpu.PrefetchScalarGridSpec(
            num_scalar_prefetch=0,
            grid=(nblk,),
            in_specs=in_specs,
            out_specs=out_specs,
            scratch_shapes=[pltpu.VMEM((ndir * bp, hp), jnp.float32)],
        ),
        compiler_params=pltpu.CompilerParams(
            dimension_semantics=("arbitrary",),   # time axis is a serial state carry
            vmem_limit_bytes=vmem_limit,
        ),
    )(*x_args, h0, prep["wih"], prep["whh"], prep["bih"], prep["bhn"])

    return list(results[:ndir]), results[ndir]


# ----------------------------------------------------------------------------
# GRUFrame wrapper: weight prep (once), layer stacking, minimal XLA glue.
# ----------------------------------------------------------------------------
class GRUFramePallas:
    def __init__(self, cell_params, bidirectional=False, stream_dtype=jnp.float32):
        """
        cell_params: list over layers; each entry is a tuple over directions of
                     (w_ih, w_hh, b_ih, b_hh) with PyTorch GRUCell shapes
                     (w_ih: (3H, D), w_hh: (3H, H), biases: (3H,)).
        stream_dtype: dtype of the layer-activation stream / W_ih (f32 here for exact
                      parity with the f32 reference; bf16 halves the remaining HBM stream
                      where the precision budget allows).
        """
        self.num_layers = len(cell_params)
        self.num_directions = 2 if bidirectional else 1
        self.stream_dtype = jnp.dtype(stream_dtype)

        self.prepped = []
        prev_H = prev_Hp = None
        for layer_idx, layer in enumerate(cell_params):
            ndir = self.num_directions
            w_hh0 = jnp.asarray(layer[0][1], jnp.float32)
            w_ih0 = jnp.asarray(layer[0][0], jnp.float32)
            H = w_hh0.shape[1]
            D_in = w_ih0.shape[1]
            Hp = _round_up(H, 128)            # lane-align each gate block
            if layer_idx == 0:
                n_chunks, chunk_w = 1, D_in
                Dp = _round_up(max(D_in, 1), 128)
            else:
                n_chunks, chunk_w = ndir, prev_H
                Dp = prev_Hp
                assert D_in == n_chunks * chunk_w

            wih_stack = jnp.zeros((ndir * n_chunks, Dp, 3 * Hp), jnp.float32)
            whh_stack = jnp.zeros((ndir, Hp, 3 * Hp), jnp.float32)
            bih_stack = jnp.zeros((ndir, 1, 3 * Hp), jnp.float32)
            bhn_stack = jnp.zeros((ndir, 1, Hp), jnp.float32)

            for d, (w_ih, w_hh, b_ih, b_hh) in enumerate(layer[:ndir]):
                w_ih = jnp.asarray(w_ih, jnp.float32)
                w_hh = jnp.asarray(w_hh, jnp.float32)
                b_ih = jnp.asarray(b_ih, jnp.float32)
                b_hh = jnp.asarray(b_hh, jnp.float32)
                for g in range(3):
                    # Gate-offset layout: gate g at columns [g*Hp, g*Hp+H); padded lanes
                    # are zero so padded hidden units stay exactly 0 forever.
                    whh_stack = whh_stack.at[d, :H, g * Hp:g * Hp + H].set(
                        w_hh[g * H:(g + 1) * H, :].T)
                    for c in range(n_chunks):
                        blkw = w_ih[g * H:(g + 1) * H, c * chunk_w:(c + 1) * chunk_w].T
                        wih_stack = wih_stack.at[d * n_chunks + c, :chunk_w,
                                                 g * Hp:g * Hp + H].set(blkw)
                    bias_g = b_ih[g * H:(g + 1) * H]
                    if g < 2:                      # fold b_hr / b_hz into projection bias
                        bias_g = bias_g + b_hh[g * H:(g + 1) * H]
                    bih_stack = bih_stack.at[d, 0, g * Hp:g * Hp + H].set(bias_g)
                bhn_stack = bhn_stack.at[d, 0, :H].set(b_hh[2 * H:3 * H])

            self.prepped.append(dict(
                wih=wih_stack.astype(self.stream_dtype),   # projection weights (off crit path)
                whh=whh_stack.astype(jnp.bfloat16),        # recurrent weights (critical path)
                bih=bih_stack, bhn=bhn_stack,
                H=H, Hp=Hp, Dp=Dp, n_chunks=n_chunks, chunk_w=chunk_w))
            prev_H, prev_Hp = H, Hp

    def _choose_tiling(self, S, Bp):
        """Derive t_blk from a VMEM budget (worst layer) + an explicit vmem limit."""
        cap = _vmem_capacity_bytes()
        budget = int(0.5 * cap)
        sbytes = self.stream_dtype.itemsize
        ndir = self.num_directions
        per_t, resident = 0, 0
        for p in self.prepped:
            stream = Bp * (2 * ndir * p["n_chunks"] * p["Dp"] * sbytes     # x, dbl-buffered
                           + 2 * ndir * p["Hp"] * sbytes                    # out, dbl-buffered
                           + ndir * 3 * p["Hp"] * 4)                        # in-kernel gi (f32)
            res = (ndir * p["n_chunks"] * p["Dp"] * 3 * p["Hp"] * sbytes    # W_ih
                   + ndir * p["Hp"] * 3 * p["Hp"] * 2                       # W_hh bf16
                   + 8 * ndir * Bp * p["Hp"] * 4)                           # h0/hn/scratch slack
            per_t = max(per_t, stream)
            resident = max(resident, res)
        t_blk = max(1, (budget - resident) // max(per_t, 1))
        t_blk = int(min(t_blk, 32, max(S, 1)))     # cap unroll length; no need past S
        t_blk = max(t_blk, 1)
        vmem_limit = int(min(cap - (4 << 20),
                             max(resident + per_t * t_blk + (8 << 20), 32 << 20)))
        return t_blk, vmem_limit

    def __call__(self, x, dropout_mask_reset=None, init_hidden=None):
        """
        x: (seq_len, batch, input_size)
        returns: output (S, B, num_directions*H), h_n (num_layers*num_directions, B, H)
        """
        # TODO(synk): dropout_mask_reset drives variational-dropout state in the original
        # cells; deterministic standard GRUCell math is used here (dropout == 0 path).
        S, B, D = x.shape
        ndir = self.num_directions
        Bp = _round_up(max(B, 8), 8)
        t_blk, vmem_limit = self._choose_tiling(S, Bp)
        nblk = pl.cdiv(S, t_blk)
        S_pad = nblk * t_blk

        # Pad x once (small) and flatten (time, batch) -> rows; layer activations stay in
        # this padded, flattened layout until the very end (no per-layer pad/slice/concat).
        p0 = self.prepped[0]
        x_p = jnp.zeros((S_pad, Bp, p0["Dp"]), self.stream_dtype)
        x_p = x_p.at[:S, :B, :D].set(x.astype(self.stream_dtype))
        chunks = [x_p.reshape(S_pad * Bp, p0["Dp"])]

        last_hidden = []
        outs = chunks
        for layer_idx in range(self.num_layers):
            p = self.prepped[layer_idx]
            H, Hp = p["H"], p["Hp"]
            if init_hidden is None:
                h0 = jnp.zeros((ndir * Bp, Hp), jnp.float32)
            else:
                parts = []
                for d in range(ndir):
                    h = jnp.asarray(init_hidden[layer_idx * ndir + d], jnp.float32)
                    parts.append(jnp.zeros((Bp, Hp), jnp.float32).at[:B, :H].set(h))
                h0 = jnp.concatenate(parts, axis=0)

            outs, hn = _gru_layer_call(
                chunks, h0, p, ndir=ndir, seq_len=S, seq_pad=S_pad, t_blk=t_blk,
                bp=Bp, out_dtype=self.stream_dtype, vmem_limit=vmem_limit)

            for d in range(ndir):
                last_hidden.append(hn[d * Bp:d * Bp + B, :H])
            chunks = outs   # next layer consumes fwd/bwd outputs directly (no concat)

        H_last, Hp_last = self.prepped[-1]["H"], self.prepped[-1]["Hp"]
        dir_out = [o.reshape(S_pad, Bp, Hp_last)[:S, :B, :H_last] for o in outs]
        output = jnp.concatenate(dir_out, axis=-1) if ndir == 2 else dir_out[0]
        output = output.astype(x.dtype)
        last_hidden_tensor = jnp.stack(last_hidden, axis=0).astype(x.dtype)
        # TODO(synk): PackedSequence / non-uniform length masking path not reproduced;
        # this covers the uniform_length=True branch of the module.
        return output, last_hidden_tensor


# ----------------------------------------------------------------------------
# Pure-JAX reference (PyTorch GRUCell semantics) for correctness checking.
# ----------------------------------------------------------------------------
def _gru_cell_ref(x, h, w_ih, w_hh, b_ih, b_hh):
    gi = x @ w_ih.T + b_ih
    gh = h @ w_hh.T + b_hh
    H = h.shape[-1]
    i_r, i_z, i_n = gi[:, :H], gi[:, H:2 * H], gi[:, 2 * H:]
    h_r, h_z, h_n = gh[:, :H], gh[:, H:2 * H], gh[:, 2 * H:]
    r = jax.nn.sigmoid(i_r + h_r)
    z = jax.nn.sigmoid(i_z + h_z)
    n = jnp.tanh(i_n + r * h_n)
    return (1.0 - z) * n + z * h


def gru_frame_ref(x, params, bidirectional):
    ndir = 2 if bidirectional else 1
    layer_output = x
    last = []
    for layer_params in params:
        dir_outs = []
        for d in range(ndir):
            w_ih, w_hh, b_ih, b_hh = layer_params[d]
            H = w_hh.shape[1]
            h = jnp.zeros((x.shape[1], H), x.dtype)
            seq = layer_output if d == 0 else layer_output[::-1]
            ys = []
            for t in range(seq.shape[0]):
                h = _gru_cell_ref(seq[t], h, w_ih, w_hh, b_ih, b_hh)
                ys.append(h)
            y = jnp.stack(ys, 0)
            if d == 1:
                y = y[::-1]
            dir_outs.append(y)
            last.append(h)
        layer_output = jnp.concatenate(dir_outs, -1) if ndir == 2 else dir_outs[0]
    return layer_output, jnp.stack(last, 0)


# ----------------------------------------------------------------------------
# Deterministic parameter construction (PyTorch GRUCell init: U(-1/sqrt(H), 1/sqrt(H)))
# ----------------------------------------------------------------------------
def make_gru_params(key, num_layers, num_directions, input_size, hidden_size):
    params = []
    bound = 1.0 / float(jnp.sqrt(hidden_size))
    for layer in range(num_layers):
        in_dim = input_size if layer == 0 else hidden_size * num_directions
        dirs = []
        for d in range(num_directions):
            key, k1, k2, k3, k4 = jax.random.split(key, 5)
            w_ih = jax.random.uniform(k1, (3 * hidden_size, in_dim),
                                      minval=-bound, maxval=bound, dtype=jnp.float32)
            w_hh = jax.random.uniform(k2, (3 * hidden_size, hidden_size),
                                      minval=-bound, maxval=bound, dtype=jnp.float32)
            b_ih = jax.random.uniform(k3, (3 * hidden_size,),
                                      minval=-bound, maxval=bound, dtype=jnp.float32)
            b_hh = jax.random.uniform(k4, (3 * hidden_size,),
                                      minval=-bound, maxval=bound, dtype=jnp.float32)
            dirs.append((w_ih, w_hh, b_ih, b_hh))
        params.append(tuple(dirs))
    return params


if __name__ == "__main__":
    SEQ, BATCH, INPUT, HIDDEN = 8, 4, 16, 32
    NUM_LAYERS = 2

    key = jax.random.PRNGKey(0)
    key, kx = jax.random.split(key)
    x = jax.random.normal(kx, (SEQ, BATCH, INPUT), dtype=jnp.float32)

    for bidirectional in (False, True):
        ndir = 2 if bidirectional else 1
        params = make_gru_params(jax.random.fold_in(key, ndir),
                                 NUM_LAYERS, ndir, INPUT, HIDDEN)
        model = GRUFramePallas(params, bidirectional=bidirectional)

        run = jax.jit(lambda inp, m=model: m(inp))
        output, h_n = run(x)
        output = jax.block_until_ready(output)
        h_n = jax.block_until_ready(h_n)

        assert output.shape == (SEQ, BATCH, ndir * HIDDEN), output.shape
        assert h_n.shape == (NUM_LAYERS * ndir, BATCH, HIDDEN), h_n.shape
        assert bool(jnp.all(jnp.isfinite(output))) and bool(jnp.all(jnp.isfinite(h_n)))

        # Correctness vs. pure-JAX f32 reference; bf16 recurrent matmul -> loose tolerance.
        out_ref, hn_ref = gru_frame_ref(x, params, bidirectional)
        assert bool(jnp.allclose(output, out_ref, atol=5e-2, rtol=5e-2)), (
            float(jnp.max(jnp.abs(output - out_ref))))
        assert bool(jnp.allclose(h_n, hn_ref, atol=5e-2, rtol=5e-2)), (
            float(jnp.max(jnp.abs(h_n - hn_ref))))

    print("KERNEL_OK")
</pallas_src>

<mosaic_0001>
module attributes {stable_mosaic.version = 11 : i64} {
  func.func @_gru_layer_kernel(%arg0: i32, %arg1: memref<64x128xf32, #tpu.memory_space<vmem>>, %arg2: memref<8x128xf32, #tpu.memory_space<vmem>>, %arg3: memref<1x128x384xf32, #tpu.memory_space<vmem>>, %arg4: memref<1x128x384xbf16, #tpu.memory_space<vmem>>, %arg5: memref<1x1x384xf32, #tpu.memory_space<vmem>>, %arg6: memref<1x1x128xf32, #tpu.memory_space<vmem>>, %arg7: memref<64x128xf32, #tpu.memory_space<vmem>>, %arg8: memref<8x128xf32, #tpu.memory_space<vmem>>, %arg9: memref<8x128xf32, #tpu.memory_space<vmem>>) attributes {dimension_semantics = [#tpu.dimension_semantics<arbitrary>], iteration_bounds = array<i64: 1>, scalar_prefetch = 0 : i64, scratch_operands = 1 : i64, tpu.core_type = #tpu.core_type<tc>, window_params = [{transform_indices = @transform_0, window_bounds = array<i64: 64, 128>}, {pipeline_mode = #tpu.pipeline_mode<synchronous>, transform_indices = @transform_1, window_bounds = array<i64: 8, 128>}, {pipeline_mode = #tpu.pipeline_mode<synchronous>, transform_indices = @transform_2, window_bounds = array<i64: 1, 128, 384>}, {pipeline_mode = #tpu.pipeline_mode<synchronous>, transform_indices = @transform_3, window_bounds = array<i64: 1, 128, 384>}, {pipeline_mode = #tpu.pipeline_mode<synchronous>, transform_indices = @transform_4, window_bounds = array<i64: 1, 1, 384>}, {pipeline_mode = #tpu.pipeline_mode<synchronous>, transform_indices = @transform_5, window_bounds = array<i64: 1, 1, 128>}, {transform_indices = @transform_6, window_bounds = array<i64: 64, 128>}, {pipeline_mode = #tpu.pipeline_mode<synchronous>, transform_indices = @transform_7, window_bounds = array<i64: 8, 128>}]} {
    %c0_i32 = arith.constant 0 : i32
    %0 = arith.cmpi eq, %arg0, %c0_i32 : i32
    %1 = arith.extui %0 : i1 to i32
    %c0_i32_0 = arith.constant 0 : i32
    %2 = arith.cmpi ne, %1, %c0_i32_0 : i32
    scf.if %2 {
      %c0_53 = arith.constant 0 : index
      %c0_54 = arith.constant 0 : index
      %258 = vector.load %arg2[%c0_53, %c0_54] : memref<8x128xf32, #tpu.memory_space<vmem>>, vector<8x128xf32>
      %c0_55 = arith.constant 0 : index
      %c0_56 = arith.constant 0 : index
      %259 = vector.load %arg9[%c0_55, %c0_56] : memref<8x128xf32, #tpu.memory_space<vmem>>, vector<8x128xf32>
      tpu.vector_store %arg9[%c0_55, %c0_56], %258 {strides = array<i32>} : memref<8x128xf32, #tpu.memory_space<vmem>>, vector<8x128xf32>,
    } else {
    }
    %c0 = arith.constant 0 : index
    %c0_1 = arith.constant 0 : index
    %3 = vector.load %arg1[%c0, %c0_1] : memref<64x128xf32, #tpu.memory_space<vmem>>, vector<64x128xf32>
    %c0_2 = arith.constant 0 : index
    %c0_3 = arith.constant 0 : index
    %c0_4 = arith.constant 0 : index
    %4 = vector.load %arg3[%c0_2, %c0_3, %c0_4] : memref<1x128x384xf32, #tpu.memory_space<vmem>>, vector<1x128x384xf32>
    %5 = vector.shape_cast %4 : vector<1x128x384xf32> to vector<128x384xf32>
    %cst = arith.constant dense<0.000000e+00> : vector<64x384xf32>
    %6 = tpu.matmul %3, %5, %cst {dimension_numbers = #tpu.dot_dimension_numbers<[1], [0], [0], [1], [0, 0, 1, 1], [], []>} : vector<64x128xf32>, vector<128x384xf32>, vector<64x384xf32> -> vector<64x384xf32>
    %c0_5 = arith.constant 0 : index
    %c0_6 = arith.constant 0 : index
    %c0_7 = arith.constant 0 : index
    %7 = vector.load %arg5[%c0_5, %c0_6, %c0_7] : memref<1x1x384xf32, #tpu.memory_space<vmem>>, vector<1x1x384xf32>
    %8 = vector.shape_cast %7 : vector<1x1x384xf32> to vector<1x384xf32>
    %9 = vector.broadcast %8 : vector<1x384xf32> to vector<64x384xf32>
    %10 = arith.addf %6, %9 : vector<64x384xf32>
    %c0_8 = arith.constant 0 : index
    %c0_9 = arith.constant 0 : index
    %c0_10 = arith.constant 0 : index
    %11 = vector.load %arg4[%c0_8, %c0_9, %c0_10] : memref<1x128x384xbf16, #tpu.memory_space<vmem>>, vector<1x128x384xbf16>
    %12 = vector.shape_cast %11 : vector<1x128x384xbf16> to vector<128x384xbf16>
    %c0_11 = arith.constant 0 : index
    %c0_12 = arith.constant 0 : index
    %c0_13 = arith.constant 0 : index
    %13 = vector.load %arg6[%c0_11, %c0_12, %c0_13] : memref<1x1x128xf32, #tpu.memory_space<vmem>>, vector<1x1x128xf32>
    %14 = vector.shape_cast %13 : vector<1x1x128xf32> to vector<1x128xf32>
    %c0_14 = arith.constant 0 : index
    %c0_15 = arith.constant 0 : index
    %15 = vector.load %arg9[%c0_14, %c0_15] : memref<8x128xf32, #tpu.memory_space<vmem>>, vector<8x128xf32>
    %16 = vector.extract_strided_slice %10 {offsets = [0, 0], sizes = [8, 384], strides = [1, 1]} : vector<64x384xf32> to vector<8x384xf32>
    %17 = arith.truncf %15 : vector<8x128xf32> to vector<8x128xbf16>
    %cst_16 = arith.constant dense<0.000000e+00> : vector<8x384xf32>
    %18 = tpu.matmul %17, %12, %cst_16 {dimension_numbers = #tpu.dot_dimension_numbers<[1], [0], [0], [1], [0, 0, 1, 1], [], []>} : vector<8x128xbf16>, vector<128x384xbf16>, vector<8x384xf32> -> vector<8x384xf32>
    %19 = vector.extract_strided_slice %16 {offsets = [0, 0], sizes = [8, 128], strides = [1, 1]} : vector<8x384xf32> to vector<8x128xf32>
    %20 = vector.extract_strided_slice %16 {offsets = [0, 128], sizes = [8, 128], strides = [1, 1]} : vector<8x384xf32> to vector<8x128xf32>
    %21 = vector.extract_strided_slice %16 {offsets = [0, 256], sizes = [8, 128], strides = [1, 1]} : vector<8x384xf32> to vector<8x128xf32>
    %22 = vector.extract_strided_slice %18 {offsets = [0, 0], sizes = [8, 128], strides = [1, 1]} : vector<8x384xf32> to vector<8x128xf32>
    %23 = vector.extract_strided_slice %18 {offsets = [0, 128], sizes = [8, 128], strides = [1, 1]} : vector<8x384xf32> to vector<8x128xf32>
    %24 = vector.extract_strided_slice %18 {offsets = [0, 256], sizes = [8, 128], strides = [1, 1]} : vector<8x384xf32> to vector<8x128xf32>
    %25 = vector.broadcast %14 : vector<1x128xf32> to vector<8x128xf32>
    %26 = arith.addf %24, %25 : vector<8x128xf32>
    %27 = arith.addf %19, %22 : vector<8x128xf32>
    %28 = arith.negf %27 : vector<8x128xf32>
    %29 = math.exp %28 : vector<8x128xf32>
    %cst_17 = arith.constant 1.000000e+00 : f32
    %30 = vector.broadcast %cst_17 : f32 to vector<8x128xf32>
    %31 = arith.addf %30, %29 : vector<8x128xf32>
    %32 = arith.divf %30, %31 : vector<8x128xf32>
    %33 = arith.addf %20, %23 : vector<8x128xf32>
    %34 = arith.negf %33 : vector<8x128xf32>
    %35 = math.exp %34 : vector<8x128xf32>
    %cst_18 = arith.constant 1.000000e+00 : f32
    %36 = vector.broadcast %cst_18 : f32 to vector<8x128xf32>
    %37 = arith.addf %36, %35 : vector<8x128xf32>
    %38 = arith.divf %36, %37 : vector<8x128xf32>
    %39 = arith.mulf %32, %26 : vector<8x128xf32>
    %40 = arith.addf %21, %39 : vector<8x128xf32>
    %41 = math.tanh %40 : vector<8x128xf32>
    %42 = arith.subf %15, %41 : vector<8x128xf32>
    %43 = arith.mulf %38, %42 : vector<8x128xf32>
    %44 = arith.addf %41, %43 : vector<8x128xf32>
    %c0_19 = arith.constant 0 : index
    %c0_20 = arith.constant 0 : index
    %45 = vector.load %arg7[%c0_19, %c0_20] : memref<64x128xf32, #tpu.memory_space<vmem>>, vector<8x128xf32>
    tpu.vector_store %arg7[%c0_19, %c0_20], %44 {strides = array<i32>} : memref<64x128xf32, #tpu.memory_space<vmem>>, vector<8x128xf32>,
    %46 = vector.extract_strided_slice %10 {offsets = [8, 0], sizes = [8, 384], strides = [1, 1]} : vector<64x384xf32> to vector<8x384xf32>
    %47 = arith.truncf %44 : vector<8x128xf32> to vector<8x128xbf16>
    %cst_21 = arith.constant dense<0.000000e+00> : vector<8x384xf32>
    %48 = tpu.matmul %47, %12, %cst_21 {dimension_numbers = #tpu.dot_dimension_numbers<[1], [0], [0], [1], [0, 0, 1, 1], [], []>} : vector<8x128xbf16>, vector<128x384xbf16>, vector<8x384xf32> -> vector<8x384xf32>
    %49 = vector.extract_strided_slice %46 {offsets = [0, 0], sizes = [8, 128], strides = [1, 1]} : vector<8x384xf32> to vector<8x128xf32>
    %50 = vector.extract_strided_slice %46 {offsets = [0, 128], sizes = [8, 128], strides = [1, 1]} : vector<8x384xf32> to vector<8x128xf32>
    %51 = vector.extract_strided_slice %46 {offsets = [0, 256], sizes = [8, 128], strides = [1, 1]} : vector<8x384xf32> to vector<8x128xf32>
    %52 = vector.extract_strided_slice %48 {offsets = [0, 0], sizes = [8, 128], strides = [1, 1]} : vector<8x384xf32> to vector<8x128xf32>
    %53 = vector.extract_strided_slice %48 {offsets = [0, 128], sizes = [8, 128], strides = [1, 1]} : vector<8x384xf32> to vector<8x128xf32>
    %54 = vector.extract_strided_slice %48 {offsets = [0, 256], sizes = [8, 128], strides = [1, 1]} : vector<8x384xf32> to vector<8x128xf32>
    %55 = vector.broadcast %14 : vector<1x128xf32> to vector<8x128xf32>
    %56 = arith.addf %54, %55 : vector<8x128xf32>
    %57 = arith.addf %49, %52 : vector<8x128xf32>
    %58 = arith.negf %57 : vector<8x128xf32>
    %59 = math.exp %58 : vector<8x128xf32>
    %cst_22 = arith.constant 1.000000e+00 : f32
    %60 = vector.broadcast %cst_22 : f32 to vector<8x128xf32>
    %61 = arith.addf %60, %59 : vector<8x128xf32>
    %62 = arith.divf %60, %61 : vector<8x128xf32>
    %63 = arith.addf %50, %53 : vector<8x128xf32>
    %64 = arith.negf %63 : vector<8x128xf32>
    %65 = math.exp %64 : vector<8x128xf32>
    %cst_23 = arith.constant 1.000000e+00 : f32
    %66 = vector.broadcast %cst_23 : f32 to vector<8x128xf32>
    %67 = arith.addf %66, %65 : vector<8x128xf32>
    %68 = arith.divf %66, %67 : vector<8x128xf32>
    %69 = arith.mulf %62, %56 : vector<8x128xf32>
    %70 = arith.addf %51, %69 : vector<8x128xf32>
    %71 = math.tanh %70 : vector<8x128xf32>
    %72 = arith.subf %44, %71 : vector<8x128xf32>
    %73 = arith.mulf %68, %72 : vector<8x128xf32>
    %74 = arith.addf %71, %73 : vector<8x128xf32>
    %c8 = arith.constant 8 : index
    %c0_24 = arith.constant 0 : index
    %75 = vector.load %arg7[%c8, %c0_24] : memref<64x128xf32, #tpu.memory_space<vmem>>, vector<8x128xf32>
    tpu.vector_store %arg7[%c8, %c0_24], %74 {strides = array<i32>} : memref<64x128xf32, #tpu.memory_space<vmem>>, vector<8x128xf32>,
    %76 = vector.extract_strided_slice %10 {offsets = [16, 0], sizes = [8, 384], strides = [1, 1]} : vector<64x384xf32> to vector<8x384xf32>
    %77 = arith.truncf %74 : vector<8x128xf32> to vector<8x128xbf16>
    %cst_25 = arith.constant dense<0.000000e+00> : vector<8x384xf32>
    %78 = tpu.matmul %77, %12, %cst_25 {dimension_numbers = #tpu.dot_dimension_numbers<[1], [0], [0], [1], [0, 0, 1, 1], [], []>} : vector<8x128xbf16>, vector<128x384xbf16>, vector<8x384xf32> -> vector<8x384xf32>
    %79 = vector.extract_strided_slice %76 {offsets = [0, 0], sizes = [8, 128], strides = [1, 1]} : vector<8x384xf32> to vector<8x128xf32>
    %80 = vector.extract_strided_slice %76 {offsets = [0, 128], sizes = [8, 128], strides = [1, 1]} : vector<8x384xf32> to vector<8x128xf32>
    %81 = vector.extract_strided_slice %76 {offsets = [0, 256], sizes = [8, 128], strides = [1, 1]} : vector<8x384xf32> to vector<8x128xf32>
    %82 = vector.extract_strided_slice %78 {offsets = [0, 0], sizes = [8, 128], strides = [1, 1]} : vector<8x384xf32> to vector<8x128xf32>
    %83 = vector.extract_strided_slice %78 {offsets = [0, 128], sizes = [8, 128], strides = [1, 1]} : vector<8x384xf32> to vector<8x128xf32>
    %84 = vector.extract_strided_slice %78 {offsets = [0, 256], sizes = [8, 128], strides = [1, 1]} : vector<8x384xf32> to vector<8x128xf32>
    %85 = vector.broadcast %14 : vector<1x128xf32> to vector<8x128xf32>
    %86 = arith.addf %84, %85 : vector<8x128xf32>
    %87 = arith.addf %79, %82 : vector<8x128xf32>
    %88 = arith.negf %87 : vector<8x128xf32>
    %89 = math.exp %88 : vector<8x128xf32>
    %cst_26 = arith.constant 1.000000e+00 : f32
    %90 = vector.broadcast %cst_26 : f32 to vector<8x128xf32>
    %91 = arith.addf %90, %89 : vector<8x128xf32>
    %92 = arith.divf %90, %91 : vector<8x128xf32>
    %93 = arith.addf %80, %83 : vector<8x128xf32>
    %94 = arith.negf %93 : vector<8x128xf32>
    %95 = math.exp %94 : vector<8x128xf32>
    %cst_27 = arith.constant 1.000000e+00 : f32
    %96 = vector.broadcast %cst_27 : f32 to vector<8x128xf32>
    %97 = arith.addf %96, %95 : vector<8x128xf32>
    %98 = arith.divf %96, %97 : vector<8x128xf32>
    %99 = arith.mulf %92, %86 : vector<8x128xf32>
    %100 = arith.addf %81, %99 : vector<8x128xf32>
    %101 = math.tanh %100 : vector<8x128xf32>
    %102 = arith.subf %74, %101 : vector<8x128xf32>
    %103 = arith.mulf %98, %102 : vector<8x128xf32>
    %104 = arith.addf %101, %103 : vector<8x128xf32>
    %c16 = arith.constant 16 : index
    %c0_28 = arith.constant 0 : index
    %105 = vector.load %arg7[%c16, %c0_28] : memref<64x128xf32, #tpu.memory_space<vmem>>, vector<8x128xf32>
    tpu.vector_store %arg7[%c16, %c0_28], %104 {strides = array<i32>} : memref<64x128xf32, #tpu.memory_space<vmem>>, vector<8x128xf32>,
    %106 = vector.extract_strided_slice %10 {offsets = [24, 0], sizes = [8, 384], strides = [1, 1]} : vector<64x384xf32> to vector<8x384xf32>
    %107 = arith.truncf %104 : vector<8x128xf32> to vector<8x128xbf16>
    %cst_29 = arith.constant dense<0.000000e+00> : vector<8x384xf32>
    %108 = tpu.matmul %107, %12, %cst_29 {dimension_numbers = #tpu.dot_dimension_numbers<[1], [0], [0], [1], [0, 0, 1, 1], [], []>} : vector<8x128xbf16>, vector<128x384xbf16>, vector<8x384xf32> -> vector<8x384xf32>
    %109 = vector.extract_strided_slice %106 {offsets = [0, 0], sizes = [8, 128], strides = [1, 1]} : vector<8x384xf32> to vector<8x128xf32>
    %110 = vector.extract_strided_slice %106 {offsets = [0, 128], sizes = [8, 128], strides = [1, 1]} : vector<8x384xf32> to vector<8x128xf32>
    %111 = vector.extract_strided_slice %106 {offsets = [0, 256], sizes = [8, 128], strides = [1, 1]} : vector<8x384xf32> to vector<8x128xf32>
    %112 = vector.extract_strided_slice %108 {offsets = [0, 0], sizes = [8, 128], strides = [1, 1]} : vector<8x384xf32> to vector<8x128xf32>
    %113 = vector.extract_strided_slice %108 {offsets = [0, 128], sizes = [8, 128], strides = [1, 1]} : vector<8x384xf32> to vector<8x128xf32>
    %114 = vector.extract_strided_slice %108 {offsets = [0, 256], sizes = [8, 128], strides = [1, 1]} : vector<8x384xf32> to vector<8x128xf32>
    %115 = vector.broadcast %14 : vector<1x128xf32> to vector<8x128xf32>
    %116 = arith.addf %114, %115 : vector<8x128xf32>
    %117 = arith.addf %109, %112 : vector<8x128xf32>
    %118 = arith.negf %117 : vector<8x128xf32>
    %119 = math.exp %118 : vector<8x128xf32>
    %cst_30 = arith.constant 1.000000e+00 : f32
    %120 = vector.broadcast %cst_30 : f32 to vector<8x128xf32>
    %121 = arith.addf %120, %119 : vector<8x128xf32>
    %122 = arith.divf %120, %121 : vector<8x128xf32>
    %123 = arith.addf %110, %113 : vector<8x128xf32>
    %124 = arith.negf %123 : vector<8x128xf32>
    %125 = math.exp %124 : vector<8x128xf32>
    %cst_31 = arith.constant 1.000000e+00 : f32
    %126 = vector.broadcast %cst_31 : f32 to vector<8x128xf32>
    %127 = arith.addf %126, %125 : vector<8x128xf32>
    %128 = arith.divf %126, %127 : vector<8x128xf32>
    %129 = arith.mulf %122, %116 : vector<8x128xf32>
    %130 = arith.addf %111, %129 : vector<8x128xf32>
    %131 = math.tanh %130 : vector<8x128xf32>
    %132 = arith.subf %104, %131 : vector<8x128xf32>
    %133 = arith.mulf %128, %132 : vector<8x128xf32>
    %134 = arith.addf %131, %133 : vector<8x128xf32>
    %c24 = arith.constant 24 : index
    %c0_32 = arith.constant 0 : index
    %135 = vector.load %arg7[%c24, %c0_32] : memref<64x128xf32, #tpu.memory_space<vmem>>, vector<8x128xf32>
    tpu.vector_store %arg7[%c24, %c0_32], %134 {strides = array<i32>} : memref<64x128xf32, #tpu.memory_space<vmem>>, vector<8x128xf32>,
    %136 = vector.extract_strided_slice %10 {offsets = [32, 0], sizes = [8, 384], strides = [1, 1]} : vector<64x384xf32> to vector<8x384xf32>
    %137 = arith.truncf %134 : vector<8x128xf32> to vector<8x128xbf16>
    %cst_33 = arith.constant dense<0.000000e+00> : vector<8x384xf32>
    %138 = tpu.matmul %137, %12, %cst_33 {dimension_numbers = #tpu.dot_dimension_numbers<[1], [0], [0], [1], [0, 0, 1, 1], [], []>} : vector<8x128xbf16>, vector<128x384xbf16>, vector<8x384xf32> -> vector<8x384xf32>
    %139 = vector.extract_strided_slice %136 {offsets = [0, 0], sizes = [8, 128], strides = [1, 1]} : vector<8x384xf32> to vector<8x128xf32>
    %140 = vector.extract_strided_slice %136 {offsets = [0, 128], sizes = [8, 128], strides = [1, 1]} : vector<8x384xf32> to vector<8x128xf32>
    %141 = vector.extract_strided_slice %136 {offsets = [0, 256], sizes = [8, 128], strides = [1, 1]} : vector<8x384xf32> to vector<8x128xf32>
    %142 = vector.extract_strided_slice %138 {offsets = [0, 0], sizes = [8, 128], strides = [1, 1]} : vector<8x384xf32> to vector<8x128xf32>
    %143 = vector.extract_strided_slice %138 {offsets = [0, 128], sizes = [8, 128], strides = [1, 1]} : vector<8x384xf32> to vector<8x128xf32>
    %144 = vector.extract_strided_slice %138 {offsets = [0, 256], sizes = [8, 128], strides = [1, 1]} : vector<8x384xf32> to vector<8x128xf32>
    %145 = vector.broadcast %14 : vector<1x128xf32> to vector<8x128xf32>
    %146 = arith.addf %144, %145 : vector<8x128xf32>
    %147 = arith.addf %139, %142 : vector<8x128xf32>
    %148 = arith.negf %147 : vector<8x128xf32>
    %149 = math.exp %148 : vector<8x128xf32>
    %cst_34 = arith.constant 1.000000e+00 : f32
    %150 = vector.broadcast %cst_34 : f32 to vector<8x128xf32>
    %151 = arith.addf %150, %149 : vector<8x128xf32>
    %152 = arith.divf %150, %151 : vector<8x128xf32>
    %153 = arith.addf %140, %143 : vector<8x128xf32>
    %154 = arith.negf %153 : vector<8x128xf32>
    %155 = math.exp %154 : vector<8x128xf32>
    %cst_35 = arith.constant 1.000000e+00 : f32
    %156 = vector.broadcast %cst_35 : f32 to vector<8x128xf32>
    %157 = arith.addf %156, %155 : vector<8x128xf32>
    %158 = arith.divf %156, %157 : vector<8x128xf32>
    %159 = arith.mulf %152, %146 : vector<8x128xf32>
    %160 = arith.addf %141, %159 : vector<8x128xf32>
    %161 = math.tanh %160 : vector<8x128xf32>
    %162 = arith.subf %134, %161 : vector<8x128xf32>
    %163 = arith.mulf %158, %162 : vector<8x128xf32>
    %164 = arith.addf %161, %163 : vector<8x128xf32>
    %c32 = arith.constant 32 : index
    %c0_36 = arith.constant 0 : index
    %165 = vector.load %arg7[%c32, %c0_36] : memref<64x128xf32, #tpu.memory_space<vmem>>, vector<8x128xf32>
    tpu.vector_store %arg7[%c32, %c0_36], %164 {strides = array<i32>} : memref<64x128xf32, #tpu.memory_space<vmem>>, vector<8x128xf32>,
    %166 = vector.extract_strided_slice %10 {offsets = [40, 0], sizes = [8, 384], strides = [1, 1]} : vector<64x384xf32> to vector<8x384xf32>
    %167 = arith.truncf %164 : vector<8x128xf32> to vector<8x128xbf16>
    %cst_37 = arith.constant dense<0.000000e+00> : vector<8x384xf32>
    %168 = tpu.matmul %167, %12, %cst_37 {dimension_numbers = #tpu.dot_dimension_numbers<[1], [0], [0], [1], [0, 0, 1, 1], [], []>} : vector<8x128xbf16>, vector<128x384xbf16>, vector<8x384xf32> -> vector<8x384xf32>
    %169 = vector.extract_strided_slice %166 {offsets = [0, 0], sizes = [8, 128], strides = [1, 1]} : vector<8x384xf32> to vector<8x128xf32>
    %170 = vector.extract_strided_slice %166 {offsets = [0, 128], sizes = [8, 128], strides = [1, 1]} : vector<8x384xf32> to vector<8x128xf32>
    %171 = vector.extract_strided_slice %166 {offsets = [0, 256], sizes = [8, 128], strides = [1, 1]} : vector<8x384xf32> to vector<8x128xf32>
    %172 = vector.extract_strided_slice %168 {offsets = [0, 0], sizes = [8, 128], strides = [1, 1]} : vector<8x384xf32> to vector<8x128xf32>
    %173 = vector.extract_strided_slice %168 {offsets = [0, 128], sizes = [8, 128], strides = [1, 1]} : vector<8x384xf32> to vector<8x128xf32>
    %174 = vector.extract_strided_slice %168 {offsets = [0, 256], sizes = [8, 128], strides = [1, 1]} : vector<8x384xf32> to vector<8x128xf32>
    %175 = vector.broadcast %14 : vector<1x128xf32> to vector<8x128xf32>
    %176 = arith.addf %174, %175 : vector<8x128xf32>
    %177 = arith.addf %169, %172 : vector<8x128xf32>
    %178 = arith.negf %177 : vector<8x128xf32>
    %179 = math.exp %178 : vector<8x128xf32>
    %cst_38 = arith.constant 1.000000e+00 : f32
    %180 = vector.broadcast %cst_38 : f32 to vector<8x128xf32>
    %181 = arith.addf %180, %179 : vector<8x128xf32>
    %182 = arith.divf %180, %181 : vector<8x128xf32>
    %183 = arith.addf %170, %173 : vector<8x128xf32>
    %184 = arith.negf %183 : vector<8x128xf32>
    %185 = math.exp %184 : vector<8x128xf32>
    %cst_39 = arith.constant 1.000000e+00 : f32
    %186 = vector.broadcast %cst_39 : f32 to vector<8x128xf32>
    %187 = arith.addf %186, %185 : vector<8x128xf32>
    %188 = arith.divf %186, %187 : vector<8x128xf32>
    %189 = arith.mulf %182, %176 : vector<8x128xf32>
    %190 = arith.addf %171, %189 : vector<8x128xf32>
    %191 = math.tanh %190 : vector<8x128xf32>
    %192 = arith.subf %164, %191 : vector<8x128xf32>
    %193 = arith.mulf %188, %192 : vector<8x128xf32>
    %194 = arith.addf %191, %193 : vector<8x128xf32>
    %c40 = arith.constant 40 : index
    %c0_40 = arith.constant 0 : index
    %195 = vector.load %arg7[%c40, %c0_40] : memref<64x128xf32, #tpu.memory_space<vmem>>, vector<8x128xf32>
    tpu.vector_store %arg7[%c40, %c0_40], %194 {strides = array<i32>} : memref<64x128xf32, #tpu.memory_space<vmem>>, vector<8x128xf32>,
    %196 = vector.extract_strided_slice %10 {offsets = [48, 0], sizes = [8, 384], strides = [1, 1]} : vector<64x384xf32> to vector<8x384xf32>
    %197 = arith.truncf %194 : vector<8x128xf32> to vector<8x128xbf16>
    %cst_41 = arith.constant dense<0.000000e+00> : vector<8x384xf32>
    %198 = tpu.matmul %197, %12, %cst_41 {dimension_numbers = #tpu.dot_dimension_numbers<[1], [0], [0], [1], [0, 0, 1, 1], [], []>} : vector<8x128xbf16>, vector<128x384xbf16>, vector<8x384xf32> -> vector<8x384xf32>
    %199 = vector.extract_strided_slice %196 {offsets = [0, 0], sizes = [8, 128], strides = [1, 1]} : vector<8x384xf32> to vector<8x128xf32>
    %200 = vector.extract_strided_slice %196 {offsets = [0, 128], sizes = [8, 128], strides = [1, 1]} : vector<8x384xf32> to vector<8x128xf32>
    %201 = vector.extract_strided_slice %196 {offsets = [0, 256], sizes = [8, 128], strides = [1, 1]} : vector<8x384xf32> to vector<8x128xf32>
    %202 = vector.extract_strided_slice %198 {offsets = [0, 0], sizes = [8, 128], strides = [1, 1]} : vector<8x384xf32> to vector<8x128xf32>
    %203 = vector.extract_strided_slice %198 {offsets = [0, 128], sizes = [8, 128], strides = [1, 1]} : vector<8x384xf32> to vector<8x128xf32>
    %204 = vector.extract_strided_slice %198 {offsets = [0, 256], sizes = [8, 128], strides = [1, 1]} : vector<8x384xf32> to vector<8x128xf32>
    %205 = vector.broadcast %14 : vector<1x128xf32> to vector<8x128xf32>
    %206 = arith.addf %204, %205 : vector<8x128xf32>
    %207 = arith.addf %199, %202 : vector<8x128xf32>
    %208 = arith.negf %207 : vector<8x128xf32>
    %209 = math.exp %208 : vector<8x128xf32>
    %cst_42 = arith.constant 1.000000e+00 : f32
    %210 = vector.broadcast %cst_42 : f32 to vector<8x128xf32>
    %211 = arith.addf %210, %209 : vector<8x128xf32>
    %212 = arith.divf %210, %211 : vector<8x128xf32>
    %213 = arith.addf %200, %203 : vector<8x128xf32>
    %214 = arith.negf %213 : vector<8x128xf32>
    %215 = math.exp %214 : vector<8x128xf32>
    %cst_43 = arith.constant 1.000000e+00 : f32
    %216 = vector.broadcast %cst_43 : f32 to vector<8x128xf32>
    %217 = arith.addf %216, %215 : vector<8x128xf32>
    %218 = arith.divf %216, %217 : vector<8x128xf32>
    %219 = arith.mulf %212, %206 : vector<8x128xf32>
    %220 = arith.addf %201, %219 : vector<8x128xf32>
    %221 = math.tanh %220 : vector<8x128xf32>
    %222 = arith.subf %194, %221 : vector<8x128xf32>
    %223 = arith.mulf %218, %222 : vector<8x128xf32>
    %224 = arith.addf %221, %223 : vector<8x128xf32>
    %c48 = arith.constant 48 : index
    %c0_44 = arith.constant 0 : index
    %225 = vector.load %arg7[%c48, %c0_44] : memref<64x128xf32, #tpu.memory_space<vmem>>, vector<8x128xf32>
    tpu.vector_store %arg7[%c48, %c0_44], %224 {strides = array<i32>} : memref<64x128xf32, #tpu.memory_space<vmem>>, vector<8x128xf32>,
    %226 = vector.extract_strided_slice %10 {offsets = [56, 0], sizes = [8, 384], strides = [1, 1]} : vector<64x384xf32> to vector<8x384xf32>
    %227 = arith.truncf %224 : vector<8x128xf32> to vector<8x128xbf16>
    %cst_45 = arith.constant dense<0.000000e+00> : vector<8x384xf32>
    %228 = tpu.matmul %227, %12, %cst_45 {dimension_numbers = #tpu.dot_dimension_numbers<[1], [0], [0], [1], [0, 0, 1, 1], [], []>} : vector<8x128xbf16>, vector<128x384xbf16>, vector<8x384xf32> -> vector<8x384xf32>
    %229 = vector.extract_strided_slice %226 {offsets = [0, 0], sizes = [8, 128], strides = [1, 1]} : vector<8x384xf32> to vector<8x128xf32>
    %230 = vector.extract_strided_slice %226 {offsets = [0, 128], sizes = [8, 128], strides = [1, 1]} : vector<8x384xf32> to vector<8x128xf32>
    %231 = vector.extract_strided_slice %226 {offsets = [0, 256], sizes = [8, 128], strides = [1, 1]} : vector<8x384xf32> to vector<8x128xf32>
    %232 = vector.extract_strided_slice %228 {offsets = [0, 0], sizes = [8, 128], strides = [1, 1]} : vector<8x384xf32> to vector<8x128xf32>
    %233 = vector.extract_strided_slice %228 {offsets = [0, 128], sizes = [8, 128], strides = [1, 1]} : vector<8x384xf32> to vector<8x128xf32>
    %234 = vector.extract_strided_slice %228 {offsets = [0, 256], sizes = [8, 128], strides = [1, 1]} : vector<8x384xf32> to vector<8x128xf32>
    %235 = vector.broadcast %14 : vector<1x128xf32> to vector<8x128xf32>
    %236 = arith.addf %234, %235 : vector<8x128xf32>
    %237 = arith.addf %229, %232 : vector<8x128xf32>
    %238 = arith.negf %237 : vector<8x128xf32>
    %239 = math.exp %238 : vector<8x128xf32>
    %cst_46 = arith.constant 1.000000e+00 : f32
    %240 = vector.broadcast %cst_46 : f32 to vector<8x128xf32>
    %241 = arith.addf %240, %239 : vector<8x128xf32>
    %242 = arith.divf %240, %241 : vector<8x128xf32>
    %243 = arith.addf %230, %233 : vector<8x128xf32>
    %244 = arith.negf %243 : vector<8x128xf32>
    %245 = math.exp %244 : vector<8x128xf32>
    %cst_47 = arith.constant 1.000000e+00 : f32
    %246 = vector.broadcast %cst_47 : f32 to vector<8x128xf32>
    %247 = arith.addf %246, %245 : vector<8x128xf32>
    %248 = arith.divf %246, %247 : vector<8x128xf32>
    %249 = arith.mulf %242, %236 : vector<8x128xf32>
    %250 = arith.addf %231, %249 : vector<8x128xf32>
    %251 = math.tanh %250 : vector<8x128xf32>
    %252 = arith.subf %224, %251 : vector<8x128xf32>
    %253 = arith.mulf %248, %252 : vector<8x128xf32>
    %254 = arith.addf %251, %253 : vector<8x128xf32>
    %c56 = arith.constant 56 : index
    %c0_48 = arith.constant 0 : index
    %255 = vector.load %arg7[%c56, %c0_48] : memref<64x128xf32, #tpu.memory_space<vmem>>, vector<8x128xf32>
    tpu.vector_store %arg7[%c56, %c0_48], %254 {strides = array<i32>} : memref<64x128xf32, #tpu.memory_space<vmem>>, vector<8x128xf32>,
    %c0_49 = arith.constant 0 : index
    %c0_50 = arith.constant 0 : index
    %256 = vector.load %arg9[%c0_49, %c0_50] : memref<8x128xf32, #tpu.memory_space<vmem>>, vector<8x128xf32>
    tpu.vector_store %arg9[%c0_49, %c0_50], %254 {strides = array<i32>} : memref<8x128xf32, #tpu.memory_space<vmem>>, vector<8x128xf32>,
    %c0_51 = arith.constant 0 : index
    %c0_52 = arith.constant 0 : index
    %257 = vector.load %arg8[%c0_51, %c0_52] : memref<8x128xf32, #tpu.memory_space<vmem>>, vector<8x128xf32>
    tpu.vector_store %arg8[%c0_51, %c0_52], %254 {strides = array<i32>} : memref<8x128xf32, #tpu.memory_space<vmem>>, vector<8x128xf32>,
    return
  }
  func.func @transform_0(%arg0: i32) -> (i32, i32) {
    %c0_i32 = arith.constant 0 : i32
    %c0_i32_0 = arith.constant 0 : i32
    return %arg0, %c0_i32 : i32, i32
  }
  func.func @transform_1(%arg0: i32) -> (i32, i32) {
    %c0_i32 = arith.constant 0 : i32
    %c0_i32_0 = arith.constant 0 : i32
    %c0_i32_1 = arith.constant 0 : i32
    return %c0_i32, %c0_i32_0 : i32, i32
  }
  func.func @transform_2(%arg0: i32) -> (i32, i32, i32) {
    %c0_i32 = arith.constant 0 : i32
    %c0_i32_0 = arith.constant 0 : i32
    %c0_i32_1 = arith.constant 0 : i32
    %c0_i32_2 = arith.constant 0 : i32
    return %c0_i32, %c0_i32_0, %c0_i32_1 : i32, i32, i32
  }
  func.func @transform_3(%arg0: i32) -> (i32, i32, i32) {
    %c0_i32 = arith.constant 0 : i32
    %c0_i32_0 = arith.constant 0 : i32
    %c0_i32_1 = arith.constant 0 : i32
    %c0_i32_2 = arith.constant 0 : i32
    return %c0_i32, %c0_i32_0, %c0_i32_1 : i32, i32, i32
  }
  func.func @transform_4(%arg0: i32) -> (i32, i32, i32) {
    %c0_i32 = arith.constant 0 : i32
    %c0_i32_0 = arith.constant 0 : i32
    %c0_i32_1 = arith.constant 0 : i32
    %c0_i32_2 = arith.constant 0 : i32
    return %c0_i32, %c0_i32_0, %c0_i32_1 : i32, i32, i32
  }
  func.func @transform_5(%arg0: i32) -> (i32, i32, i32) {
    %c0_i32 = arith.constant 0 : i32
    %c0_i32_0 = arith.constant 0 : i32
    %c0_i32_1 = arith.constant 0 : i32
    %c0_i32_2 = arith.constant 0 : i32
    return %c0_i32, %c0_i32_0, %c0_i32_1 : i32, i32, i32
  }
  func.func @transform_6(%arg0: i32) -> (i32, i32) {
    %c0_i32 = arith.constant 0 : i32
    %c0_i32_0 = arith.constant 0 : i32
    return %arg0, %c0_i32 : i32, i32
  }
  func.func @transform_7(%arg0: i32) -> (i32, i32) {
    %c0_i32 = arith.constant 0 : i32
    %c0_i32_0 = arith.constant 0 : i32
    %c0_i32_1 = arith.constant 0 : i32
    return %c0_i32, %c0_i32_0 : i32, i32
  }
}

</mosaic_0001>

<bundles_post_ra>
// kernel: _lambda_.2
= control target key start
LH: loop header
LB: loop body
LE: loop exit
PB: predicated region body
PF: predicated region fallthrough
CT: control target
= control target key end

     0   :  { %13 = vsyncpa [#allocation4], 0  ;;  %s1911_s0 = inlined_call_operand.vmem [shape: f32[64,128], index: 0, kind: input, shape index: {}]   ;;  %s1912_s1 = inlined_call_operand.vmem [shape: f32[8,128], index: 1, kind: input, shape index: {}]   ;;  %s1913_s2 = inlined_call_operand.hbm [shape: f32[1,128,384], index: 2, kind: input, shape index: {}]   ;;  %s1914_s3 = inlined_call_operand.hbm [shape: bf16[1,128,384], index: 3, kind: input, shape index: {}]   ;;  %s1915_s4 = inlined_call_operand.vmem [shape: f32[1,1,384], index: 4, kind: input, shape index: {}]   ;;  %s1916_s5 = inlined_call_operand.vmem [shape: f32[1,1,128], index: 5, kind: input, shape index: {}]   ;;  %s1917_s6 = inlined_call_operand.vmem [shape: f32[64,128], index: 6, kind: output, shape index: {0}]   ;;  %s1918_s7 = inlined_call_operand.vmem [shape: f32[8,128], index: 7, kind: output, shape index: {1}]  }
   0x1   :  { %s23_s26 = sshll.u32 %s1913_s2, 4  ;;  %s24_s26 = int_to_ptr.hbm [resolvable:$true] %s23_s26 }
   0x2   :  { %14 = vsyncpa [#allocation6], 0  ;;  %s1407_s27 = smov [#allocation3]   ;;  %s36_s8 = sshll.u32 %s1914_s3, 4  ;;  %s37_s8 = int_to_ptr.hbm [resolvable:$true] %s36_s8 }
   0x3   :  { %s25_s28 = sshll.u32 %s1407_s27, 4  ;;  %s1408_s9 = smov 384   ;;  %s26_s28 = int_to_ptr.vmem [resolvable:$true] %s25_s28 }
   0x4   :  { %s1409_s10 = smov 24   ;;  %s1410_s11 = smov [#allocation5]  }
   0x5   :  { %31 = dma.hbm_to_vmem [thread:$0]  %s24_s26, 6144, %s26_s28, [#allocation4], %s1408_s9, %s1408_s9, %s1409_s10  }
   0x6   :  { %s38_s12 = sshll.u32 %s1410_s11, 4  ;;  %s1411_s13 = smov 192   ;;  %s39_s12 = int_to_ptr.vmem [resolvable:$true] %s38_s12 }
   0x7   :  { %s1412_s14 = smov 12  }
   0x8   :  { %44 = dma.hbm_to_vmem [thread:$0]  %s37_s8, 3072, %s39_s12, [#allocation6], %s1411_s13, %s1411_s13, %s1412_s14  }
   0x9   :  { %1403 = dma.done.wait [#allocation4], 6144  }
   0xa   :  { %1404 = vsyncadd [#allocation4], 4294961152 }
   0xb   :  { %1405 = dma.done.wait [#allocation6], 3072  }
   0xc   :  { %1406 = vsyncadd [#allocation6], 4294964224  ;;  %v116_v0 = vld [vmem:[#allocation3 + $0x168] sm:$0xff]  ;;  %v113_v1 = vld [vmem:[#allocation3 + $0x150] sm:$0xff] }
   0xd   :  { %v1217_v2 = vld [vmem:[#allocation5 + $0xa8] sm:$0xf]  ;;  %127 = vmatpush.msra.mxu0 %v116_v0  ;;  %v1265_v3 = vld [vmem:[#allocation5 + $0xb0] sm:$0xf0]  ;;  %v110_v5 = vld [vmem:[#allocation3 + $0x138] sm:$0xff] }
   0xe   :  { %v1459_v4 = vor.u32 %v1265_v3, %v1217_v2  ;;  %v1205_v6 = vld [vmem:[#allocation5 + $0x90] sm:$0xf]  ;;  %v1262_v7 = vld [vmem:[#allocation5 + $0x98] sm:$0xf0]  ;;  %v107_v8 = vld [vmem:[#allocation3 + $0x120] sm:$0xff] }
   0xf   :  { %128 = vmatpush.msra.mxu0 %v113_v1  ;;  %v1462_v9 = vor.u32 %v1262_v7, %v1205_v6  ;;  %v1193_v10 = vld [vmem:[#allocation5 + $0x78] sm:$0xf]  ;;  %v1259_v11 = vld [vmem:[#allocation5 + $0x80] sm:$0xf0]  ;;  %v104_v12 = vld [vmem:[#allocation3 + $0x108] sm:$0xff] }
  0x10   :  { %413 = vmatpush.bf16.msra.mxu3 %v1459_v4  ;;  %v101_v13 = vld [vmem:[#allocation3 + $0xf0] sm:$0xff]  ;;  %v1465_v14 = vor.u32 %v1259_v11, %v1193_v10  ;;  %v1181_v15 = vld [vmem:[#allocation5 + $0x60] sm:$0xf]  ;;  %v1256_v16 = vld [vmem:[#allocation5 + $0x68] sm:$0xf0] }
  0x11   :  { %129 = vmatpush.msra.mxu0 %v110_v5  ;;  %v98_v17 = vld [vmem:[#allocation3 + $0xd8] sm:$0xff]  ;;  %v95_v18 = vld [vmem:[#allocation3 + $0xc0] sm:$0xff]  ;;  %v1468_v19 = vor.u32 %v1256_v16, %v1181_v15  ;;  %v117_v20 = vld [vmem:[#allocation3 + $0x170] sm:$0xff] }
  0x12   :  { %v1169_v21 = vld [vmem:[#allocation5 + $0x48] sm:$0xf]  ;;  %v1253_v22 = vld [vmem:[#allocation5 + $0x50] sm:$0xf0]  ;;  %168 = vmatpush.msra.mxu1 %v117_v20  ;;  %v114_v23 = vld [vmem:[#allocation3 + $0x158] sm:$0xff] }
  0x13   :  { %130 = vmatpush.msra.mxu0 %v107_v8  ;;  %v92_v24 = vld [vmem:[#allocation3 + $0xa8] sm:$0xff]  ;;  %v111_v25 = vld [vmem:[#allocation3 + $0x140] sm:$0xff]  ;;  %v89_v26 = vld [vmem:[#allocation3 + $0x90] sm:$0xff]  ;;  %v1471_v27 = vor.u32 %v1253_v22, %v1169_v21 }
  0x14   :  { %414 = vmatpush.bf16.msra.mxu3 %v1462_v9  ;;  %169 = vmatpush.msra.mxu1 %v114_v23  ;;  %v108_v28 = vld [vmem:[#allocation3 + $0x128] sm:$0xff]  ;;  %v1157_v29 = vld [vmem:[#allocation5 + $0x30] sm:$0xf]  ;;  %v1250_v30 = vld [vmem:[#allocation5 + $0x38] sm:$0xf0] }
  0x15   :  { %131 = vmatpush.msra.mxu0 %v104_v12  ;;  %v86_v31 = vld [vmem:[#allocation3 + $0x78] sm:$0xff]  ;;  %v105_v32 = vld [vmem:[#allocation3 + $0x110] sm:$0xff]  ;;  %v83_v33 = vld [vmem:[#allocation3 + $0x60] sm:$0xff]  ;;  %v1474_v34 = vor.u32 %v1250_v30, %v1157_v29 }
  0x16   :  { %170 = vmatpush.msra.mxu1 %v111_v25  ;;  %v102_v35 = vld [vmem:[#allocation3 + $0xf8] sm:$0xff]  ;;  %v1247_v37 = vld [vmem:[#allocation5 + $0x20] sm:$0xf0]  ;;  %v80_v38 = vld [vmem:[#allocation3 + $0x48] sm:$0xff] }
  0x17   :  { %132 = vmatpush.msra.mxu0 %v101_v13  ;;  %v1145_v36 = vld [vmem:[#allocation5 + $0x18] sm:$0xf]  ;;  %v99_v39 = vld [vmem:[#allocation3 + $0xe0] sm:$0xff]  ;;  %v77_v40 = vld [vmem:[#allocation3 + $0x30] sm:$0xff] }
  0x18   :  { %415 = vmatpush.bf16.msra.mxu3 %v1465_v14  ;;  %171 = vmatpush.msra.mxu1 %v108_v28  ;;  %v1477_v41 = vor.u32 %v1247_v37, %v1145_v36  ;;  %v74_v42 = vld [vmem:[#allocation3 + $0x18] sm:$0xff]  ;;  %v1133_v43 = vld [vmem:[#allocation5] sm:$0xf]  ;;  %v96_v44 = vld [vmem:[#allocation3 + $0xc8] sm:$0xff] }
  0x19   :  { %133 = vmatpush.msra.mxu0 %v98_v17  ;;  %v1244_v45 = vld [vmem:[#allocation5 + $0x8] sm:$0xf0]  ;;  %v1219_v47 = vld [vmem:[#allocation5 + $0xb4] sm:$0xf0]  ;;  %v1225_v48 = vld [vmem:[#allocation5 + $0xb0] sm:$0xf] }
  0x1a   :  { %172 = vmatpush.msra.mxu1 %v105_v32  ;;  %v1264_v46 = vld [vmem:[#allocation5 + $0xac] sm:$0xf]  ;;  %v1266_v49 = vld [vmem:[#allocation5 + $0xb8] sm:$0xf0]  ;;  %v93_v50 = vld [vmem:[#allocation3 + $0xb0] sm:$0xff]  ;;  %v1480_v52 = vor.u32 %v1244_v45, %v1133_v43 }
  0x1b   :  { %134 = vmatpush.msra.mxu0 %v95_v18  ;;  %v71_v51 = vld [vmem:[#allocation3] sm:$0xff]  ;;  %v90_v54 = vld [vmem:[#allocation3 + $0x98] sm:$0xff]  ;;  %v1492_v56 = vor.u32 %v1264_v46, %v1219_v47  ;;  %v1494_v57 = vor.u32 %v1266_v49, %v1225_v48  ;;  %v1261_v58 = vld [vmem:[#allocation5 + $0x94] sm:$0xf] }
  0x1c   :  { %416 = vmatpush.bf16.msra.mxu3 %v1468_v19  ;;  %173 = vmatpush.msra.mxu1 %v102_v35  ;;  %v1485_v53 = vld [vmem:[%s1912_s1] sm:$0xff]  ;;  %v118_v59 = vld [vmem:[#allocation3 + $0x178] sm:$0xff]  ;;  %v84_v6 = vld [vmem:[#allocation3 + $0x68] sm:$0xff] }
  0x1d   :  { %135 = vmatpush.msra.mxu0 %v92_v24  ;;  %v1490_v55 = vld [vmem:[%s1911_s0] sm:$0xff]  ;;  %v1213_v61 = vld [vmem:[#allocation5 + $0x98] sm:$0xf]  ;;  %209 = vmatpush.msra.mxu2 %v118_v59  ;;  %v1498_v63 = vpack.c.bf16 %v1485_v53, %v1485_v53  ;;  %v1258_v3 = vld [vmem:[#allocation5 + $0x7c] sm:$0xf] }
  0x1e   :  { %174 = vmatpush.msra.mxu1 %v99_v39  ;;  %v1207_v60 = vld [vmem:[#allocation5 + $0x9c] sm:$0xf0]  ;;  %v1263_v62 = vld [vmem:[#allocation5 + $0xa0] sm:$0xf0]  ;;  %v112_v7 = vld [vmem:[#allocation3 + $0x148] sm:$0xff] }
  0x1f   :  { %136 = vmatpush.msra.mxu0 %v89_v26  ;;  %v87_v0 = vld [vmem:[#allocation3 + $0x80] sm:$0xff]  ;;  %v1504_v2 = vor.u32 %v1261_v58, %v1207_v60  ;;  %v1506_v5 = vor.u32 %v1263_v62, %v1213_v61  ;;  %v1195_v8 = vld [vmem:[#allocation5 + $0x84] sm:$0xf0]  ;;  %v1260_v11 = vld [vmem:[#allocation5 + $0x88] sm:$0xf0] }
  0x20   :  { %417 = vmatpush.bf16.msra.mxu3 %v1471_v27  ;;  %175 = vmatpush.msra.mxu1 %v96_v44  ;;  %v115_v1 = vld [vmem:[#allocation3 + $0x160] sm:$0xff]  ;;  %v81_v12 = vld [vmem:[#allocation3 + $0x50] sm:$0xff]  ;;  %v1513_v15 = vld [vmem:[%s1911_s0 + $0x8] sm:$0xff]  ;;  %v1515_v16 = vor.u32 %v1258_v3, %v1195_v8 }
  0x21   :  { %137 = vmatpush.msra.mxu0 %v86_v31  ;;  %v1201_v10 = vld [vmem:[#allocation5 + $0x80] sm:$0xf]  ;;  %210 = vmatpush.msra.mxu2 %v115_v1  ;;  %v109_v13 = vld [vmem:[#allocation3 + $0x130] sm:$0xff]  ;;  %v1255_v17 = vld [vmem:[#allocation5 + $0x64] sm:$0xf] }
  0x22   :  { %176 = vmatpush.msra.mxu1 %v93_v50  ;;  %v1518_v18 = vor.u32 %v1260_v11, %v1201_v10  ;;  %v78_v20 = vld [vmem:[#allocation3 + $0x38] sm:$0xff]  ;;  %v1183_v21 = vld [vmem:[#allocation5 + $0x6c] sm:$0xf0]  ;;  %v1189_v22 = vld [vmem:[#allocation5 + $0x68] sm:$0xf] }
  0x23   :  { %138 = vmatpush.msra.mxu0 %v83_v33  ;;  %211 = vmatpush.msra.mxu2 %v112_v7  ;;  %v1257_v23 = vld [vmem:[#allocation5 + $0x70] sm:$0xf0]  ;;  %v75_v24 = vld [vmem:[#allocation3 + $0x20] sm:$0xff]  ;;  %v106_v25 = vld [vmem:[#allocation3 + $0x118] sm:$0xff]  ;;  %v1522_v26 = vor.u32 %v1255_v17, %v1183_v21 }
  0x24   :  { %418 = vmatpush.bf16.msra.mxu3 %v1474_v34  ;;  %177 = vmatpush.msra.mxu1 %v90_v54  ;;  %v1252_v28 = vld [vmem:[#allocation5 + $0x4c] sm:$0xf]  ;;  %v1525_v29 = vor.u32 %v1257_v23, %v1189_v22  ;;  %v103_v31 = vld [vmem:[#allocation3 + $0x100] sm:$0xff]  ;;  %v1171_v32 = vld [vmem:[#allocation5 + $0x54] sm:$0xf0] }
  0x25   :  { %139 = vmatpush.msra.mxu0 %v80_v38  ;;  %212 = vmatpush.msra.mxu2 %v109_v13  ;;  %v72_v30 = vld [vmem:[#allocation3 + $0x8] sm:$0xff]  ;;  %v1177_v33 = vld [vmem:[#allocation5 + $0x50] sm:$0xf]  ;;  %v1254_v35 = vld [vmem:[#allocation5 + $0x58] sm:$0xf0]  ;;  %v1533_v38 = vor.u32 %v1252_v28, %v1171_v32 }
  0x26   :  { %178 = vmatpush.msra.mxu1 %v87_v0  ;;  %v100_v36 = vld [vmem:[#allocation3 + $0xe8] sm:$0xff]  ;;  %v1531_v37 = vld [vmem:[%s1911_s0 + $0x10] sm:$0xff]  ;;  %v1159_v43 = vld [vmem:[#allocation5 + $0x3c] sm:$0xf0] }
  0x27   :  { %140 = vmatpush.msra.mxu0 %v77_v40  ;;  %213 = vmatpush.msra.mxu2 %v106_v25  ;;  %v1249_v39 = vld [vmem:[#allocation5 + $0x34] sm:$0xf]  ;;  %v1536_v40 = vor.u32 %v1254_v35, %v1177_v33  ;;  %v1165_v44 = vld [vmem:[#allocation5 + $0x38] sm:$0xf]  ;;  %v1251_v45 = vld [vmem:[#allocation5 + $0x40] sm:$0xf0] }
  0x28   :  { %419 = vmatpush.bf16.msra.mxu3 %v1477_v41  ;;  %179 = vmatpush.msra.mxu1 %v84_v6  ;;  %v94_v46 = vld [vmem:[#allocation3 + $0xb8] sm:$0xff]  ;;  %v1542_v47 = vor.u32 %v1249_v39, %v1159_v43  ;;  %v1545_v49 = vor.u32 %v1251_v45, %v1165_v44  ;;  %v91_v50 = vld [vmem:[#allocation3 + $0xa0] sm:$0xff]  ;;  %v1248_v58 = vld [vmem:[#allocation5 + $0x28] sm:$0xf0] }
  0x29   :  { %141 = vmatpush.msra.mxu0 %v74_v42  ;;  %214 = vmatpush.msra.mxu2 %v103_v31  ;;  %v97_v42 = vld [vmem:[#allocation3 + $0xd0] sm:$0xff]  ;;  %v1246_v48 = vld [vmem:[#allocation5 + $0x1c] sm:$0xf]  ;;  %v1153_v54 = vld [vmem:[#allocation5 + $0x20] sm:$0xf] }
  0x2a   :  { %180 = vmatpush.msra.mxu1 %v81_v12  ;;  %v88_v59 = vld [vmem:[#allocation3 + $0x88] sm:$0xff]  ;;  %v1552_v60 = vld [vmem:[%s1911_s0 + $0x18] sm:$0xff]  ;;  %v1557_v62 = vor.u32 %v1248_v58, %v1153_v54  ;;  %v85_v0 = vld [vmem:[#allocation3 + $0x70] sm:$0xff] }
  0x2b   :  { %142 = vmatpush.msra.mxu0 %v71_v51  ;;  %215 = vmatpush.msra.mxu2 %v100_v36  ;;  %v1147_v51 = vld [vmem:[#allocation5 + $0x24] sm:$0xf0]  ;;  %v1243_v1 = vld [vmem:[#allocation5 + $0x4] sm:$0xf]  ;;  %v1135_v3 = vld [vmem:[#allocation5 + $0xc] sm:$0xf0] }
  0x2c   :  { %420 = vmatpush.bf16.msra.mxu3 %v1480_v52  ;;  %143 = vmatmul.f32.vlgmr.msra.gmra.mxu0 %v1490_v55  ;;  %v1554_v61 = vor.u32 %v1246_v48, %v1147_v51  ;;  %v82_v6 = vld [vmem:[#allocation3 + $0x58] sm:$0xff]  ;;  %v1141_v7 = vld [vmem:[#allocation5 + $0x8] sm:$0xf]  ;;  %v1245_v8 = vld [vmem:[#allocation5 + $0x10] sm:$0xf0]  ;;  %v1563_v10 = vor.u32 %v1243_v1, %v1135_v3 }
  0x2d   :  { %439 = vmatpush.bf16.msrb.mxu0 %v1494_v57  ;;  %181 = vmatpush.msra.mxu1 %v78_v20  ;;  %v79_v11 = vld [vmem:[#allocation3 + $0x40] sm:$0xff]  ;;  %v1566_v12 = vor.u32 %v1245_v8, %v1141_v7  ;;  %v76_v13 = vld [vmem:[#allocation3 + $0x28] sm:$0xff]  ;;  %v73_v20 = vld [vmem:[#allocation3 + $0x10] sm:$0xff] }
  0x2e   :  { %216 = vmatpush.msra.mxu2 %v97_v42  ;;  %v67_v17 = vld [vmem:[%s1911_s0 + $0x20] sm:$0xff]  ;;  %v68_v21 = vld [vmem:[%s1911_s0 + $0x28] sm:$0xff] }
  0x2f   :  { %421 = vmatmul.bf16.vlgmr.msra.gmra.mxu3 %v1498_v63  ;;  %182 = vmatpush.msra.mxu1 %v75_v24  ;;  %v119_v22 = vld [vmem:[%s1915_s4] sm:$0x7] }
  0x30   :  { %426 = vmatpush.bf16.msrb.mxu3 %v1492_v56  ;;  %217 = vmatpush.msra.mxu2 %v94_v46  ;;  %v121_v23 = vperm.slane %v119_v22, 0  ;;  %v1660_v43 = vperm.slane %v119_v22, 1 }
  0x31   :  { %440 = vmatpush.bf16.msrb.mxu0 %v1506_v5  ;;  %183 = vmatpush.msra.mxu1 %v72_v30 }
  0x32   :  { %184 = vmatmul.f32.vlgmr.msra.gmra.mxu1 %v1490_v55  ;;  %218 = vmatpush.msra.mxu2 %v91_v50 }
  0x33   :  { %504 = vmatpush.bf16.msrb.mxu1 %v1459_v4 }
  0x34   :  { %427 = vmatpush.bf16.msrb.mxu3 %v1504_v2  ;;  %146 = vmatmul.f32.gmra.mxu0 %v1513_v15 }
  0x35   :  { %441 = vmatpush.bf16.msrb.mxu0 %v1518_v18  ;;  %219 = vmatpush.msra.mxu2 %v88_v59 }
  0x37   :  { %505 = vmatpush.bf16.msrb.mxu1 %v1462_v9  ;;  %220 = vmatpush.msra.mxu2 %v85_v0 }
  0x38   :  { %428 = vmatpush.bf16.msrb.mxu3 %v1515_v16 }
  0x39   :  { %442 = vmatpush.bf16.msrb.mxu0 %v1525_v29  ;;  %221 = vmatpush.msra.mxu2 %v82_v6 }
  0x3a   :  { %187 = vmatmul.f32.gmra.mxu1 %v1513_v15 }
  0x3b   :  { %506 = vmatpush.bf16.msrb.mxu1 %v1465_v14  ;;  %222 = vmatpush.msra.mxu2 %v79_v11 }
  0x3c   :  { %429 = vmatpush.bf16.msrb.mxu3 %v1522_v26  ;;  %149 = vmatmul.f32.gmra.mxu0 %v1531_v37 }
  0x3d   :  { %443 = vmatpush.bf16.msrb.mxu0 %v1536_v40  ;;  %223 = vmatpush.msra.mxu2 %v76_v13 }
  0x3f   :  { %507 = vmatpush.bf16.msrb.mxu1 %v1468_v19  ;;  %224 = vmatpush.msra.mxu2 %v73_v20  ;;  %v1669_v20 = vperm.slane %v119_v22, 2 }
  0x40   :  { %430 = vmatpush.bf16.msrb.mxu3 %v1533_v38  ;;  %225 = vmatmul.f32.vlgmr.msra.gmra.mxu2 %v1490_v55  ;;  %v69_v55 = vld [vmem:[%s1911_s0 + $0x30] sm:$0xff] }
  0x41   :  { %444 = vmatpush.bf16.msrb.mxu0 %v1545_v49  ;;  %517 = vmatpush.bf16.msrb.mxu2 %v1492_v56  ;;  %1920 = vst [vmem:[#allocation9_spill] sm:$0xff] %v1669_v20 }
  0x42   :  { %190 = vmatmul.f32.gmra.mxu1 %v1531_v37 }
  0x43   :  { %508 = vmatpush.bf16.msrb.mxu1 %v1471_v27 }
  0x44   :  { %431 = vmatpush.bf16.msrb.mxu3 %v1542_v47  ;;  %152 = vmatmul.f32.gmra.mxu0 %v1552_v60 }
  0x45   :  { %445 = vmatpush.bf16.msrb.mxu0 %v1557_v62  ;;  %518 = vmatpush.bf16.msrb.mxu2 %v1504_v2 }
  0x47   :  { %509 = vmatpush.bf16.msrb.mxu1 %v1474_v34 }
  0x48   :  { %432 = vmatpush.bf16.msrb.mxu3 %v1554_v61  ;;  %228 = vmatmul.f32.gmra.mxu2 %v1513_v15  ;;  %v70_v15 = vld [vmem:[%s1911_s0 + $0x38] sm:$0xff] }
  0x49   :  { %446 = vmatpush.bf16.msrb.mxu0 %v1566_v12  ;;  %519 = vmatpush.bf16.msrb.mxu2 %v1515_v16 }
  0x4a   :  { %193 = vmatmul.f32.gmra.mxu1 %v1552_v60 }
  0x4b   :  { %510 = vmatpush.bf16.msrb.mxu1 %v1477_v41 }
  0x4c   :  { %433 = vmatpush.bf16.msrb.mxu3 %v1563_v10  ;;  %155 = vmatmul.f32.gmra.mxu0 %v67_v17 }
  0x4d   :  { %592 = vmatpush.bf16.msra.mxu0 %v1459_v4  ;;  %520 = vmatpush.bf16.msrb.mxu2 %v1522_v26 }
  0x4f   :  { %434 = vmatmul.bf16.vlgmr.msrb.gmra.mxu3 %v1498_v63  ;;  %511 = vmatpush.bf16.msrb.mxu1 %v1480_v52 }
  0x50   :  { %530 = vmatpush.bf16.msra.mxu3 %v1494_v57  ;;  %231 = vmatmul.f32.gmra.mxu2 %v1531_v37 }
  0x51   :  { %593 = vmatpush.bf16.msra.mxu0 %v1462_v9  ;;  %521 = vmatpush.bf16.msrb.mxu2 %v1533_v38 }
  0x52   :  { %196 = vmatmul.f32.gmra.mxu1 %v67_v17 }
  0x53   :  { %605 = vmatpush.bf16.msra.mxu1 %v1492_v56 }
  0x54   :  { %531 = vmatpush.bf16.msra.mxu3 %v1506_v5  ;;  %158 = vmatmul.f32.gmra.mxu0 %v68_v21 }
  0x55   :  { %594 = vmatpush.bf16.msra.mxu0 %v1465_v14  ;;  %522 = vmatpush.bf16.msrb.mxu2 %v1542_v47 }
  0x57   :  { %606 = vmatpush.bf16.msra.mxu1 %v1504_v2 }
  0x58   :  { %532 = vmatpush.bf16.msra.mxu3 %v1518_v18  ;;  %234 = vmatmul.f32.gmra.mxu2 %v1552_v60 }
  0x59   :  { %595 = vmatpush.bf16.msra.mxu0 %v1468_v19  ;;  %523 = vmatpush.bf16.msrb.mxu2 %v1554_v61 }
  0x5a   :  { %199 = vmatmul.f32.gmra.mxu1 %v68_v21 }
  0x5b   :  { %607 = vmatpush.bf16.msra.mxu1 %v1515_v16 }
  0x5c   :  { %533 = vmatpush.bf16.msra.mxu3 %v1525_v29  ;;  %161 = vmatmul.f32.gmra.mxu0 %v69_v55 }
  0x5d   :  { %596 = vmatpush.bf16.msra.mxu0 %v1471_v27  ;;  %524 = vmatpush.bf16.msrb.mxu2 %v1563_v10 }
  0x5f   :  { %608 = vmatpush.bf16.msra.mxu1 %v1522_v26 }
  0x60   :  { %534 = vmatpush.bf16.msra.mxu3 %v1536_v40  ;;  %237 = vmatmul.f32.gmra.mxu2 %v67_v17 }
  0x61   :  { %597 = vmatpush.bf16.msra.mxu0 %v1474_v34  ;;  %618 = vmatpush.bf16.msra.mxu2 %v1494_v57 }
  0x62   :  { %202 = vmatmul.f32.gmra.mxu1 %v69_v55 }
  0x63   :  { %609 = vmatpush.bf16.msra.mxu1 %v1533_v38 }
  0x64   :  { %535 = vmatpush.bf16.msra.mxu3 %v1545_v49  ;;  %164 = vmatmul.f32.gmra.mxu0 %v70_v15 }
  0x65   :  { %598 = vmatpush.bf16.msra.mxu0 %v1477_v41  ;;  %619 = vmatpush.bf16.msra.mxu2 %v1506_v5 }
  0x67   :  { %610 = vmatpush.bf16.msra.mxu1 %v1542_v47 }
  0x68   :  { %536 = vmatpush.bf16.msra.mxu3 %v1557_v62  ;;  %240 = vmatmul.f32.gmra.mxu2 %v68_v21 }
  0x69   :  { %599 = vmatpush.bf16.msra.mxu0 %v1480_v52  ;;  %620 = vmatpush.bf16.msra.mxu2 %v1518_v18 }
  0x6a   :  { %205 = vmatmul.f32.gmra.mxu1 %v70_v15 }
  0x6b   :  { %611 = vmatpush.bf16.msra.mxu1 %v1554_v61 }
  0x6c   :  { %537 = vmatpush.bf16.msra.mxu3 %v1566_v12  ;;  %447 = vmatmul.bf16.vlgmr.msrb.gmra.mxu0 %v1498_v63 }
  0x6d   :  { %693 = vmatpush.bf16.msrb.mxu0 %v1492_v56  ;;  %621 = vmatpush.bf16.msra.mxu2 %v1525_v29 }
  0x6f   :  { %612 = vmatpush.bf16.msra.mxu1 %v1563_v10 }
  0x70   :  { %680 = vmatpush.bf16.msrb.mxu3 %v1459_v4  ;;  %243 = vmatmul.f32.gmra.mxu2 %v69_v55 }
  0x71   :  { %694 = vmatpush.bf16.msrb.mxu0 %v1504_v2  ;;  %622 = vmatpush.bf16.msra.mxu2 %v1536_v40 }
  0x74   :  { %681 = vmatpush.bf16.msrb.mxu3 %v1462_v9 }
  0x75   :  { %695 = vmatpush.bf16.msrb.mxu0 %v1515_v16  ;;  %623 = vmatpush.bf16.msra.mxu2 %v1545_v49 }
  0x78   :  { %682 = vmatpush.bf16.msrb.mxu3 %v1465_v14  ;;  %246 = vmatmul.f32.gmra.mxu2 %v70_v15 }
  0x79   :  { %696 = vmatpush.bf16.msrb.mxu0 %v1522_v26  ;;  %624 = vmatpush.bf16.msra.mxu2 %v1557_v62 }
  0x7c   :  { %683 = vmatpush.bf16.msrb.mxu3 %v1468_v19 }
  0x7d   :  { %697 = vmatpush.bf16.msrb.mxu0 %v1533_v38  ;;  %625 = vmatpush.bf16.msra.mxu2 %v1566_v12 }
  0x80   :  { %684 = vmatpush.bf16.msrb.mxu3 %v1471_v27 }
  0x81   :  { %698 = vmatpush.bf16.msrb.mxu0 %v1542_v47 }
  0x84   :  { %685 = vmatpush.bf16.msrb.mxu3 %v1474_v34 }
  0x85   :  { %699 = vmatpush.bf16.msrb.mxu0 %v1554_v61 }
  0x88   :  { %686 = vmatpush.bf16.msrb.mxu3 %v1477_v41 }
  0x89   :  { %700 = vmatpush.bf16.msrb.mxu0 %v1563_v10 }
  0x8c   :  { %687 = vmatpush.bf16.msrb.mxu3 %v1480_v52 }
  0xa9   :  { %v144_v63 = vpop.f32.mrf.mxu0 }
  0xaa   :  { %v145_v30 = vadd.f32 %v144_v63, %v121_v23 }
  0xaf   :  { %v185_v45 = vpop.f32.mrf.mxu1 }
  0xb0   :  { %v186_v50 = vadd.f32 %v185_v45, %v1660_v43 }
  0xb1   :  { %v147_v24 = vpop.f32.mrf.mxu0 }
  0xb2   :  { %v1654_v25 = vadd.f32 %v147_v24, %v121_v23  ;;  %v422_v28 = vpop.f32.mrf.mxu3 }
  0xb3   :  { %v456_v32 = vadd.f32 %v422_v28, %v145_v30 }
  0xb5   :  { %v1227_v36 = vmul.f32 -1.442695, %v456_v32 }
  0xb7   :  { %1274 = vpow2.f32 %v1227_v36 }
  0xb9   :  { %v150_v31 = vpop.f32.mrf.mxu0 }
  0xba   :  { %v1656_v33 = vadd.f32 %v150_v31, %v121_v23  ;;  %v424_v35 = vpop.f32.mrf.mxu3 }
  0xbb   :  { %v1679_v35 = vld [vmem:[%s1916_s5] ss:$0 sm:$0xff] }
  0xbd   :  { %v1275_v42 = vpop.eup %1274 }
  0xbe   :  { %v460_v48 = vadd.f32 1.0, %v1275_v42 }
  0xc0   :  { %1276 = vrcp.f32 %v460_v48  ;;  %v472_v32 = vand.u32 2147483648, %v460_v48  ;;  %vm466_vm1 = vweird.f32 %v460_v48  ;;  %v470_v22 = vand.u32 2147483647, %v460_v48 }
  0xc1   :  { %v153_v37 = vpop.f32.mrf.mxu0 }
  0xc2   :  { %v1658_v39 = vadd.f32 %v153_v37, %v121_v23  ;;  %v473_v45 = vor.u32 1.1754944e-38, %v472_v32  ;;  %vm471_vm3 = vcmp.eq.f32.partialorder %v470_v22, 8.507059e+37 }
  0xc3   :  { %v226_v6 = vpop.f32.mrf.mxu2 }
  0xc6   :  { %v1277_v0 = vpop.eup %1276 }
  0xc7   :  { %v462_v3 = vmul.f32 %v1277_v0, %v460_v48  ;;  %vm467_vm0 = vweird.f32 %v1277_v0 }
  0xc8   :  { %vm468_vm2 = vmor %vm466_vm1, %vm467_vm0 }
  0xc9   :  { %v156_v44 = vpop.f32.mrf.mxu0  ;;  %v463_v17 = vsub.f32 1.0, %v462_v3 }
  0xca   :  { %v1662_v46 = vadd.f32 %v156_v44, %v121_v23 }
  0xcb   :  { %v464_v21 = vmul.f32 %v1277_v0, %v463_v17  ;;  %v229_v55 = vpop.f32.mrf.mxu2 }
  0xcc   :  { %v1672_v63 = vadd.f32 %v229_v55, %v1669_v20 }
  0xcd   :  { %v465_v30 = vadd.f32 %v1277_v0, %v464_v21 }
  0xcf   :  { %v469_v36 = vsel %vm468_vm2, %v1277_v0, %v465_v30 }
  0xd1   :  { %v159_v58 = vpop.f32.mrf.mxu0 }
  0xd2   :  { %v435_v51 = vpop.f32.mrf.mxu3  ;;  %v1665_v60 = vadd.f32 %v159_v58, %v121_v23 }
  0xd3   :  { %v476_v54 = vadd.f32 %v435_v51, %v186_v50  ;;  %v232_v37 = vpop.f32.mrf.mxu2  ;;  %v227_v51 = vadd.f32 %v226_v6, %v1669_v20 }
  0xd5   :  { %v1228_v59 = vmul.f32 -1.442695, %v476_v54  ;;  %v474_v54 = vsel %vm471_vm3, %v473_v45, %v469_v36 }
  0xd7   :  { %1278 = vpow2.f32 %v1228_v59 }
  0xd9   :  { %v162_v7 = vpop.f32.mrf.mxu0 }
  0xda   :  { %v437_v1 = vpop.f32.mrf.mxu3  ;;  %v1667_v11 = vadd.f32 %v162_v7, %v121_v23 }
  0xdb   :  { %v235_v0 = vpop.f32.mrf.mxu2 }
  0xdc   :  { %v1687_v17 = vadd.f32 %v235_v0, %v1669_v20 }
  0xdd   :  { %v1279_v8 = vpop.eup %1278 }
  0xde   :  { %v480_v13 = vadd.f32 1.0, %v1279_v8 }
  0xe0   :  { %1280 = vrcp.f32 %v480_v13  ;;  %vm486_vm4 = vweird.f32 %v480_v13  ;;  %v492_v48 = vand.u32 2147483648, %v480_v13  ;;  %v490_v8 = vand.u32 2147483647, %v480_v13 }
  0xe1   :  { %v165_v15 = vpop.f32.mrf.mxu0 }
  0xe2   :  { %v1674_v24 = vadd.f32 %v165_v15, %v121_v23  ;;  %v1682_v23 = vadd.f32 %v232_v37, %v1669_v20  ;;  %v493_v21 = vor.u32 1.1754944e-38, %v492_v48  ;;  %vm491_vm7 = vcmp.eq.f32.partialorder %v490_v8, 8.507059e+37 }
  0xe4   :  { %1921 = vst [vmem:[#allocation10_spill] sm:$0xff] %v1674_v24 }
  0xe6   :  { %v1281_v28 = vpop.eup %1280 }
  0xe7   :  { %v482_v31 = vmul.f32 %v1281_v28, %v480_v13  ;;  %vm487_vm5 = vweird.f32 %v1281_v28 }
  0xe8   :  { %vm488_vm6 = vmor %vm486_vm4, %vm487_vm5 }
  0xe9   :  { %v483_v42 = vsub.f32 1.0, %v482_v31  ;;  %v448_v44 = vpop.f32.mrf.mxu0  ;;  %v238_v31 = vpop.f32.mrf.mxu2 }
  0xea   :  { %v455_v50 = vadd.f32 %v1679_v35, %v448_v44  ;;  %v1691_v22 = vadd.f32 %v238_v31, %v1669_v20  ;;  %v188_v44 = vpop.f32.mrf.mxu1 }
  0xeb   :  { %v484_v59 = vmul.f32 %v1281_v28, %v483_v42 }
  0xec   :  { %v496_v58 = vmul.f32 %v474_v54, %v455_v50 }
  0xed   :  { %v485_v7 = vadd.f32 %v1281_v28, %v484_v59 }
  0xee   :  { %v497_v1 = vadd.f32 %v496_v58, %v227_v51 }
  0xef   :  { %v489_v55 = vsel %vm488_vm6, %v1281_v28, %v485_v7  ;;  %v189_v7 = vadd.f32 %v188_v44, %v1660_v43 }
  0xf0   :  { %1282 = vtanh.f32 %v497_v1  ;;  %v494_v30 = vsel %vm491_vm7, %v493_v21, %v489_v55 }
  0xf1   :  { %v450_v3 = vpop.f32.mrf.mxu0 }
  0xf2   :  { %v1731_v45 = vpop.f32.mrf.mxu1 }
  0xf6   :  { %v1283_v6 = vpop.eup %1282 }
  0xf7   :  { %v499_v15 = vsub.f32 %v1485_v53, %v1283_v6  ;;  %v241_v53 = vpop.f32.mrf.mxu2 }
  0xf8   :  { %v1703_v28 = vadd.f32 %v241_v53, %v1669_v20 }
  0xf9   :  { %v500_v32 = vmul.f32 %v499_v15, %v494_v30 }
  0xfa   :  { %v1733_v50 = vpop.f32.mrf.mxu1 }
  0xfb   :  { %v1693_v36 = vadd.f32 %v1283_v6, %v500_v32 }
  0xfd   :  { %502 = vst [vmem:[%s1917_s6] sm:$0xff] %v1693_v36  ;;  %v503_v13 = vpack.c.bf16 %v1693_v36, %v1693_v36 }
  0xff   :  { %512 = vmatmul.bf16.vlgmr.msrb.gmra.mxu1 %v503_v13  ;;  %525 = vmatmul.bf16.vlgmr.msrb.gmra.mxu2 %v503_v13  ;;  %v244_v37 = vpop.f32.mrf.mxu2 }
 0x100   :  { %538 = vmatmul.bf16.vlgmr.msra.gmra.mxu3 %v503_v13  ;;  %706 = vmatpush.bf16.msrb.mxu1 %v1494_v57  ;;  %v1712_v42 = vadd.f32 %v244_v37, %v1669_v20 }
 0x101   :  { %768 = vmatpush.bf16.msrb.mxu2 %v1459_v4  ;;  %781 = vmatpush.bf16.msra.mxu3 %v1492_v56 }
 0x102   :  { %v1735_v51 = vpop.f32.mrf.mxu1 }
 0x104   :  { %707 = vmatpush.bf16.msrb.mxu1 %v1506_v5 }
 0x105   :  { %769 = vmatpush.bf16.msrb.mxu2 %v1462_v9  ;;  %782 = vmatpush.bf16.msra.mxu3 %v1504_v2 }
 0x107   :  { %v1743_v1 = vpop.f32.mrf.mxu2 }
 0x108   :  { %708 = vmatpush.bf16.msrb.mxu1 %v1518_v18  ;;  %1923 = vst [vmem:[#allocation12_spill] sm:$0xff] %v1743_v1 }
 0x109   :  { %770 = vmatpush.bf16.msrb.mxu2 %v1465_v14  ;;  %783 = vmatpush.bf16.msra.mxu3 %v1515_v16 }
 0x10a   :  { %v1737_v54 = vpop.f32.mrf.mxu1 }
 0x10c   :  { %709 = vmatpush.bf16.msrb.mxu1 %v1525_v29 }
 0x10d   :  { %771 = vmatpush.bf16.msrb.mxu2 %v1468_v19  ;;  %784 = vmatpush.bf16.msra.mxu3 %v1522_v26 }
 0x110   :  { %710 = vmatpush.bf16.msrb.mxu1 %v1536_v40 }
 0x111   :  { %772 = vmatpush.bf16.msrb.mxu2 %v1471_v27  ;;  %785 = vmatpush.bf16.msra.mxu3 %v1533_v38 }
 0x112   :  { %v1739_v58 = vpop.f32.mrf.mxu1 }
 0x114   :  { %711 = vmatpush.bf16.msrb.mxu1 %v1545_v49 }
 0x115   :  { %773 = vmatpush.bf16.msrb.mxu2 %v1474_v34  ;;  %786 = vmatpush.bf16.msra.mxu3 %v1542_v47 }
 0x118   :  { %712 = vmatpush.bf16.msrb.mxu1 %v1557_v62 }
 0x119   :  { %774 = vmatpush.bf16.msrb.mxu2 %v1477_v41  ;;  %787 = vmatpush.bf16.msra.mxu3 %v1554_v61 }
 0x11a   :  { %v1741_v59 = vpop.f32.mrf.mxu1 }
 0x11b   :  { %1922 = vst [vmem:[#allocation11_spill] sm:$0xff] %v1741_v59 }
 0x11c   :  { %713 = vmatpush.bf16.msrb.mxu1 %v1566_v12 }
 0x11d   :  { %775 = vmatpush.bf16.msrb.mxu2 %v1480_v52  ;;  %788 = vmatpush.bf16.msra.mxu3 %v1563_v10 }
 0x17c   :  { %v513_v48 = vpop.f32.mrf.mxu1 }
 0x17d   :  { %v544_v0 = vadd.f32 %v513_v48, %v1654_v25 }
 0x17f   :  { %v1229_v3 = vmul.f32 -1.442695, %v544_v0 }
 0x181   :  { %1284 = vpow2.f32 %v1229_v3 }
 0x182   :  { %v526_v8 = vpop.f32.mrf.mxu2 }
 0x183   :  { %v564_v21 = vadd.f32 %v526_v8, %v189_v7  ;;  %v539_v55 = vpop.f32.mrf.mxu3 }
 0x184   :  { %v515_v6 = vpop.f32.mrf.mxu1 }
 0x185   :  { %v1230_v15 = vmul.f32 -1.442695, %v564_v21 }
 0x187   :  { %v1285_v30 = vpop.eup %1284  ;;  %1286 = vpow2.f32 %v1230_v15 }
 0x188   :  { %v548_v31 = vadd.f32 1.0, %v1285_v30  ;;  %v543_v30 = vadd.f32 %v1679_v35, %v539_v55 }
 0x18a   :  { %1288 = vrcp.f32 %v548_v31  ;;  %v528_v32 = vpop.f32.mrf.mxu2  ;;  %v560_v0 = vand.u32 2147483648, %v548_v31  ;;  %v558_v3 = vand.u32 2147483647, %v548_v31  ;;  %vm554_vm9 = vweird.f32 %v548_v31 }
 0x18b   :  { %v541_v13 = vpop.f32.mrf.mxu3 }
 0x18c   :  { %v561_v21 = vor.u32 1.1754944e-38, %v560_v0  ;;  %vm559_vm11 = vcmp.eq.f32.partialorder %v558_v3, 8.507059e+37 }
 0x18d   :  { %v1287_v53 = vpop.eup %1286 }
 0x18e   :  { %v568_v37 = vadd.f32 1.0, %v1287_v53 }
 0x190   :  { %v1289_v1 = vpop.eup %1288  ;;  %1290 = vrcp.f32 %v568_v37  ;;  %v580_v24 = vand.u32 2147483648, %v568_v37  ;;  %vm574_vm13 = vweird.f32 %v568_v37  ;;  %v578_v59 = vand.u32 2147483647, %v568_v37 }
 0x191   :  { %v550_v25 = vmul.f32 %v1289_v1, %v548_v31  ;;  %vm555_vm8 = vweird.f32 %v1289_v1 }
 0x192   :  { %vm556_vm10 = vmor %vm554_vm9, %vm555_vm8  ;;  %v581_v0 = vor.u32 1.1754944e-38, %v580_v24  ;;  %vm579_vm15 = vcmp.eq.f32.partialorder %v578_v59, 8.507059e+37 }
 0x193   :  { %v551_v48 = vsub.f32 1.0, %v550_v25 }
 0x195   :  { %v552_v44 = vmul.f32 %v1289_v1, %v551_v48 }
 0x196   :  { %v1291_v7 = vpop.eup %1290 }
 0x197   :  { %v570_v8 = vmul.f32 %v1291_v7, %v568_v37  ;;  %v553_v6 = vadd.f32 %v1289_v1, %v552_v44  ;;  %vm575_vm12 = vweird.f32 %v1291_v7 }
 0x198   :  { %vm576_vm14 = vmor %vm574_vm13, %vm575_vm12 }
 0x199   :  { %v571_v15 = vsub.f32 1.0, %v570_v8  ;;  %v557_v32 = vsel %vm556_vm10, %v1289_v1, %v553_v6 }
 0x19a   :  { %v562_v13 = vsel %vm559_vm11, %v561_v21, %v557_v32 }
 0x19b   :  { %v584_v53 = vmul.f32 %v562_v13, %v543_v30  ;;  %v572_v20 = vmul.f32 %v1291_v7, %v571_v15 }
 0x19d   :  { %v585_v25 = vadd.f32 %v584_v53, %v1672_v63  ;;  %v573_v48 = vadd.f32 %v1291_v7, %v572_v20  ;;  %v192_v63 = vadd.f32 %v1731_v45, %v1660_v43 }
 0x19f   :  { %1292 = vtanh.f32 %v585_v25  ;;  %v577_v31 = vsel %vm576_vm14, %v1291_v7, %v573_v48 }
 0x1a0   :  { %v582_v1 = vsel %vm579_vm15, %v581_v0, %v577_v31 }
 0x1a5   :  { %v1293_v44 = vpop.eup %1292 }
 0x1a6   :  { %v587_v55 = vsub.f32 %v1693_v36, %v1293_v44 }
 0x1a8   :  { %v588_v3 = vmul.f32 %v587_v55, %v582_v1 }
 0x1aa   :  { %v1750_v8 = vadd.f32 %v1293_v44, %v588_v3 }
 0x1ac   :  { %590 = vst [vmem:[%s1917_s6 + $0x8] sm:$0xff] %v1750_v8  ;;  %v591_v20 = vpack.c.bf16 %v1750_v8, %v1750_v8 }
 0x1ae   :  { %600 = vmatmul.bf16.vlgmr.msra.gmra.mxu0 %v591_v20  ;;  %613 = vmatmul.bf16.vlgmr.msra.gmra.mxu1 %v591_v20 }
 0x1af   :  { %626 = vmatmul.bf16.vlgmr.msra.gmra.mxu2 %v591_v20  ;;  %794 = vmatpush.bf16.msra.mxu0 %v1494_v57 }
 0x1b0   :  { %856 = vmatpush.bf16.msra.mxu1 %v1459_v4  ;;  %869 = vmatpush.bf16.msra.mxu2 %v1492_v56 }
 0x1b3   :  { %795 = vmatpush.bf16.msra.mxu0 %v1506_v5 }
 0x1b4   :  { %857 = vmatpush.bf16.msra.mxu1 %v1462_v9  ;;  %870 = vmatpush.bf16.msra.mxu2 %v1504_v2 }
 0x1b7   :  { %796 = vmatpush.bf16.msra.mxu0 %v1518_v18 }
 0x1b8   :  { %858 = vmatpush.bf16.msra.mxu1 %v1465_v14  ;;  %871 = vmatpush.bf16.msra.mxu2 %v1515_v16 }
 0x1bb   :  { %797 = vmatpush.bf16.msra.mxu0 %v1525_v29 }
 0x1bc   :  { %859 = vmatpush.bf16.msra.mxu1 %v1468_v19  ;;  %872 = vmatpush.bf16.msra.mxu2 %v1522_v26 }
 0x1bf   :  { %798 = vmatpush.bf16.msra.mxu0 %v1536_v40 }
 0x1c0   :  { %860 = vmatpush.bf16.msra.mxu1 %v1471_v27  ;;  %873 = vmatpush.bf16.msra.mxu2 %v1533_v38 }
 0x1c3   :  { %799 = vmatpush.bf16.msra.mxu0 %v1545_v49 }
 0x1c4   :  { %861 = vmatpush.bf16.msra.mxu1 %v1474_v34  ;;  %874 = vmatpush.bf16.msra.mxu2 %v1542_v47 }
 0x1c7   :  { %800 = vmatpush.bf16.msra.mxu0 %v1557_v62 }
 0x1c8   :  { %862 = vmatpush.bf16.msra.mxu1 %v1477_v41  ;;  %875 = vmatpush.bf16.msra.mxu2 %v1554_v61 }
 0x1cb   :  { %801 = vmatpush.bf16.msra.mxu0 %v1566_v12 }
 0x1cc   :  { %863 = vmatpush.bf16.msra.mxu1 %v1480_v52  ;;  %876 = vmatpush.bf16.msra.mxu2 %v1563_v10 }
 0x22b   :  { %v601_v24 = vpop.f32.mrf.mxu0  ;;  %v614_v36 = vpop.f32.mrf.mxu1 }
 0x22c   :  { %v632_v59 = vadd.f32 %v601_v24, %v1656_v33  ;;  %v652_v37 = vadd.f32 %v614_v36, %v192_v63 }
 0x22e   :  { %v1231_v7 = vmul.f32 -1.442695, %v632_v59  ;;  %v1232_v6 = vmul.f32 -1.442695, %v652_v37 }
 0x230   :  { %1294 = vpow2.f32 %v1231_v7 }
 0x231   :  { %1296 = vpow2.f32 %v1232_v6 }
 0x232   :  { %v627_v21 = vpop.f32.mrf.mxu2 }
 0x233   :  { %v603_v15 = vpop.f32.mrf.mxu0  ;;  %v616_v30 = vpop.f32.mrf.mxu1  ;;  %v631_v36 = vadd.f32 %v1679_v35, %v627_v21 }
 0x236   :  { %v1295_v32 = vpop.eup %1294 }
 0x237   :  { %v1297_v13 = vpop.eup %1296  ;;  %v636_v53 = vadd.f32 1.0, %v1295_v32 }
 0x238   :  { %v656_v25 = vadd.f32 1.0, %v1297_v13 }
 0x239   :  { %1298 = vrcp.f32 %v636_v53  ;;  %v648_v55 = vand.u32 2147483648, %v636_v53  ;;  %v646_v3 = vand.u32 2147483647, %v636_v53  ;;  %vm642_vm1 = vweird.f32 %v636_v53 }
 0x23a   :  { %1300 = vrcp.f32 %v656_v25  ;;  %v629_v48 = vpop.f32.mrf.mxu2  ;;  %v668_v32 = vand.u32 2147483648, %v656_v25  ;;  %vm662_vm5 = vweird.f32 %v656_v25  ;;  %v666_v13 = vand.u32 2147483647, %v656_v25 }
 0x23b   :  { %v649_v24 = vor.u32 1.1754944e-38, %v648_v55  ;;  %vm647_vm3 = vcmp.eq.f32.partialorder %v646_v3, 8.507059e+37 }
 0x23c   :  { %vm667_vm7 = vcmp.eq.f32.partialorder %v666_v13, 8.507059e+37 }
 0x23f   :  { %v1299_v45 = vpop.eup %1298 }
 0x240   :  { %v1301_v31 = vpop.eup %1300  ;;  %v638_v44 = vmul.f32 %v1299_v45, %v636_v53  ;;  %vm643_vm0 = vweird.f32 %v1299_v45 }
 0x241   :  { %v658_v33 = vmul.f32 %v1301_v31, %v656_v25  ;;  %vm644_vm2 = vmor %vm642_vm1, %vm643_vm0  ;;  %vm663_vm4 = vweird.f32 %v1301_v31 }
 0x242   :  { %v639_v0 = vsub.f32 1.0, %v638_v44  ;;  %vm664_vm6 = vmor %vm662_vm5, %vm663_vm4  ;;  %v669_v44 = vor.u32 1.1754944e-38, %v668_v32 }
 0x243   :  { %v659_v63 = vsub.f32 1.0, %v658_v33 }
 0x244   :  { %v640_v1 = vmul.f32 %v1299_v45, %v639_v0 }
 0x245   :  { %v660_v6 = vmul.f32 %v1301_v31, %v659_v63 }
 0x246   :  { %v641_v20 = vadd.f32 %v1299_v45, %v640_v1 }
 0x247   :  { %v661_v30 = vadd.f32 %v1301_v31, %v660_v6 }
 0x248   :  { %v645_v59 = vsel %vm644_vm2, %v1299_v45, %v641_v20 }
 0x249   :  { %v650_v37 = vsel %vm647_vm3, %v649_v24, %v645_v59  ;;  %v665_v53 = vsel %vm664_vm6, %v1301_v31, %v661_v30 }
 0x24a   :  { %v672_v7 = vmul.f32 %v650_v37, %v631_v36  ;;  %v670_v45 = vsel %vm667_vm7, %v669_v44, %v665_v53 }
 0x24c   :  { %v673_v15 = vadd.f32 %v672_v7, %v1682_v23 }
 0x24e   :  { %1302 = vtanh.f32 %v673_v15 }
 0x254   :  { %v1303_v48 = vpop.eup %1302 }
 0x255   :  { %v675_v21 = vsub.f32 %v1750_v8, %v1303_v48  ;;  %v195_v8 = vadd.f32 %v1733_v50, %v1660_v43 }
 0x257   :  { %v676_v0 = vmul.f32 %v675_v21, %v670_v45 }
 0x259   :  { %v1788_v33 = vadd.f32 %v1303_v48, %v676_v0 }
 0x25b   :  { %678 = vst [vmem:[%s1917_s6 + $0x10] sm:$0xff] %v1788_v33  ;;  %v679_v23 = vpack.c.bf16 %v1788_v33, %v1788_v33 }
 0x25d   :  { %688 = vmatmul.bf16.vlgmr.msrb.gmra.mxu3 %v679_v23  ;;  %701 = vmatmul.bf16.vlgmr.msrb.gmra.mxu0 %v679_v23 }
 0x25e   :  { %714 = vmatmul.bf16.vlgmr.msrb.gmra.mxu1 %v679_v23  ;;  %882 = vmatpush.bf16.msrb.mxu3 %v1494_v57 }
 0x25f   :  { %944 = vmatpush.bf16.msrb.mxu0 %v1459_v4  ;;  %957 = vmatpush.bf16.msrb.mxu1 %v1492_v56 }
 0x262   :  { %883 = vmatpush.bf16.msrb.mxu3 %v1506_v5 }
 0x263   :  { %945 = vmatpush.bf16.msrb.mxu0 %v1462_v9  ;;  %958 = vmatpush.bf16.msrb.mxu1 %v1504_v2 }
 0x266   :  { %884 = vmatpush.bf16.msrb.mxu3 %v1518_v18 }
 0x267   :  { %946 = vmatpush.bf16.msrb.mxu0 %v1465_v14  ;;  %959 = vmatpush.bf16.msrb.mxu1 %v1515_v16 }
 0x26a   :  { %885 = vmatpush.bf16.msrb.mxu3 %v1525_v29 }
 0x26b   :  { %947 = vmatpush.bf16.msrb.mxu0 %v1468_v19  ;;  %960 = vmatpush.bf16.msrb.mxu1 %v1522_v26 }
 0x26e   :  { %886 = vmatpush.bf16.msrb.mxu3 %v1536_v40 }
 0x26f   :  { %948 = vmatpush.bf16.msrb.mxu0 %v1471_v27  ;;  %961 = vmatpush.bf16.msrb.mxu1 %v1533_v38 }
 0x272   :  { %887 = vmatpush.bf16.msrb.mxu3 %v1545_v49 }
 0x273   :  { %949 = vmatpush.bf16.msrb.mxu0 %v1474_v34  ;;  %962 = vmatpush.bf16.msrb.mxu1 %v1542_v47 }
 0x276   :  { %888 = vmatpush.bf16.msrb.mxu3 %v1557_v62 }
 0x277   :  { %950 = vmatpush.bf16.msrb.mxu0 %v1477_v41  ;;  %963 = vmatpush.bf16.msrb.mxu1 %v1554_v61 }
 0x27a   :  { %889 = vmatpush.bf16.msrb.mxu3 %v1566_v12 }
 0x27b   :  { %951 = vmatpush.bf16.msrb.mxu0 %v1480_v52  ;;  %964 = vmatpush.bf16.msrb.mxu1 %v1563_v10 }
 0x2da   :  { %v702_v25 = vpop.f32.mrf.mxu0 }
 0x2db   :  { %v740_v31 = vadd.f32 %v702_v25, %v195_v8  ;;  %v715_v55 = vpop.f32.mrf.mxu1 }
 0x2dc   :  { %v719_v23 = vadd.f32 %v1679_v35, %v715_v55 }
 0x2dd   :  { %v1234_v1 = vmul.f32 -1.442695, %v740_v31 }
 0x2df   :  { %1304 = vpow2.f32 %v1234_v1 }
 0x2e0   :  { %v689_v3 = vpop.f32.mrf.mxu3 }
 0x2e1   :  { %v720_v20 = vadd.f32 %v689_v3, %v1658_v39 }
 0x2e2   :  { %v704_v63 = vpop.f32.mrf.mxu0 }
 0x2e3   :  { %v1233_v24 = vmul.f32 -1.442695, %v720_v20  ;;  %v717_v36 = vpop.f32.mrf.mxu1 }
 0x2e5   :  { %1306 = vpow2.f32 %v1233_v24  ;;  %v1305_v59 = vpop.eup %1304 }
 0x2e6   :  { %v744_v6 = vadd.f32 1.0, %v1305_v59 }
 0x2e8   :  { %v691_v37 = vpop.f32.mrf.mxu3  ;;  %v756_v63 = vand.u32 2147483648, %v744_v6  ;;  %vm750_vm13 = vweird.f32 %v744_v6  ;;  %v754_v24 = vand.u32 2147483647, %v744_v6 }
 0x2ea   :  { %v757_v37 = vor.u32 1.1754944e-38, %v756_v63  ;;  %vm755_vm15 = vcmp.eq.f32.partialorder %v754_v24, 8.507059e+37 }
 0x2eb   :  { %v1307_v7 = vpop.eup %1306 }
 0x2ec   :  { %v724_v15 = vadd.f32 1.0, %v1307_v7 }
 0x2ee   :  { %1308 = vrcp.f32 %v724_v15  ;;  %v736_v48 = vand.u32 2147483648, %v724_v15  ;;  %v734_v39 = vand.u32 2147483647, %v724_v15  ;;  %vm730_vm9 = vweird.f32 %v724_v15 }
 0x2ef   :  { %1310 = vrcp.f32 %v744_v6 }
 0x2f0   :  { %v737_v0 = vor.u32 1.1754944e-38, %v736_v48  ;;  %vm735_vm11 = vcmp.eq.f32.partialorder %v734_v39, 8.507059e+37 }
 0x2f4   :  { %v1309_v50 = vpop.eup %1308 }
 0x2f5   :  { %v1311_v30 = vpop.eup %1310  ;;  %v726_v32 = vmul.f32 %v1309_v50, %v724_v15  ;;  %vm731_vm8 = vweird.f32 %v1309_v50 }
 0x2f6   :  { %v746_v53 = vmul.f32 %v1311_v30, %v744_v6  ;;  %vm732_vm10 = vmor %vm730_vm9, %vm731_vm8  ;;  %vm751_vm12 = vweird.f32 %v1311_v30 }
 0x2f7   :  { %v727_v13 = vsub.f32 1.0, %v726_v32  ;;  %vm752_vm14 = vmor %vm750_vm13, %vm751_vm12 }
 0x2f8   :  { %v747_v45 = vsub.f32 1.0, %v746_v53 }
 0x2f9   :  { %v728_v44 = vmul.f32 %v1309_v50, %v727_v13 }
 0x2fa   :  { %v748_v1 = vmul.f32 %v1311_v30, %v747_v45 }
 0x2fb   :  { %v729_v21 = vadd.f32 %v1309_v50, %v728_v44 }
 0x2fc   :  { %v749_v20 = vadd.f32 %v1311_v30, %v748_v1 }
 0x2fd   :  { %v733_v8 = vsel %vm732_vm10, %v1309_v50, %v729_v21 }
 0x2fe   :  { %v738_v25 = vsel %vm735_vm11, %v737_v0, %v733_v8  ;;  %v753_v36 = vsel %vm752_vm14, %v1311_v30, %v749_v20 }
 0x2ff   :  { %v760_v31 = vmul.f32 %v738_v25, %v719_v23  ;;  %v758_v7 = vsel %vm755_vm15, %v757_v37, %v753_v36 }
 0x301   :  { %v761_v3 = vadd.f32 %v760_v31, %v1687_v17 }
 0x303   :  { %1312 = vtanh.f32 %v761_v3 }
 0x309   :  { %v1313_v59 = vpop.eup %1312 }
 0x30a   :  { %v763_v55 = vsub.f32 %v1788_v33, %v1313_v59 }
 0x30c   :  { %v764_v15 = vmul.f32 %v763_v55, %v758_v7 }
 0x30e   :  { %v1826_v50 = vadd.f32 %v1313_v59, %v764_v15 }
 0x310   :  { %766 = vst [vmem:[%s1917_s6 + $0x18] sm:$0xff] %v1826_v50  ;;  %v767_v17 = vpack.c.bf16 %v1826_v50, %v1826_v50 }
 0x312   :  { %776 = vmatmul.bf16.vlgmr.msrb.gmra.mxu2 %v767_v17  ;;  %789 = vmatmul.bf16.vlgmr.msra.gmra.mxu3 %v767_v17 }
 0x313   :  { %802 = vmatmul.bf16.vlgmr.msra.gmra.mxu0 %v767_v17  ;;  %970 = vmatpush.bf16.msrb.mxu2 %v1494_v57 }
 0x314   :  { %1032 = vmatpush.bf16.msra.mxu3 %v1459_v4  ;;  %1045 = vmatpush.bf16.msra.mxu0 %v1492_v56 }
 0x317   :  { %971 = vmatpush.bf16.msrb.mxu2 %v1506_v5 }
 0x318   :  { %1033 = vmatpush.bf16.msra.mxu3 %v1462_v9  ;;  %1046 = vmatpush.bf16.msra.mxu0 %v1504_v2  ;;  %v198_v9 = vadd.f32 %v1735_v51, %v1660_v43 }
 0x31b   :  { %972 = vmatpush.bf16.msrb.mxu2 %v1518_v18 }
 0x31c   :  { %1034 = vmatpush.bf16.msra.mxu3 %v1465_v14  ;;  %1047 = vmatpush.bf16.msra.mxu0 %v1515_v16 }
 0x31f   :  { %973 = vmatpush.bf16.msrb.mxu2 %v1525_v29 }
 0x320   :  { %1035 = vmatpush.bf16.msra.mxu3 %v1468_v19  ;;  %1048 = vmatpush.bf16.msra.mxu0 %v1522_v26 }
 0x323   :  { %974 = vmatpush.bf16.msrb.mxu2 %v1536_v40 }
 0x324   :  { %1036 = vmatpush.bf16.msra.mxu3 %v1471_v27  ;;  %1049 = vmatpush.bf16.msra.mxu0 %v1533_v38 }
 0x327   :  { %975 = vmatpush.bf16.msrb.mxu2 %v1545_v49 }
 0x328   :  { %1037 = vmatpush.bf16.msra.mxu3 %v1474_v34  ;;  %1050 = vmatpush.bf16.msra.mxu0 %v1542_v47 }
 0x32b   :  { %976 = vmatpush.bf16.msrb.mxu2 %v1557_v62 }
 0x32c   :  { %1038 = vmatpush.bf16.msra.mxu3 %v1477_v41  ;;  %1051 = vmatpush.bf16.msra.mxu0 %v1554_v61 }
 0x32f   :  { %977 = vmatpush.bf16.msrb.mxu2 %v1566_v12 }
 0x330   :  { %1039 = vmatpush.bf16.msra.mxu3 %v1480_v52  ;;  %1052 = vmatpush.bf16.msra.mxu0 %v1563_v10 }
 0x390   :  { %v803_v4 = vpop.f32.mrf.mxu0 }
 0x391   :  { %v807_v39 = vadd.f32 %v1679_v35, %v803_v4 }
 0x395   :  { %v777_v14 = vpop.f32.mrf.mxu2  ;;  %v790_v19 = vpop.f32.mrf.mxu3 }
 0x396   :  { %v808_v27 = vadd.f32 %v777_v14, %v1662_v46  ;;  %v828_v34 = vadd.f32 %v790_v19, %v198_v9 }
 0x398   :  { %v1235_v56 = vmul.f32 -1.442695, %v808_v27  ;;  %v1236_v2 = vmul.f32 -1.442695, %v828_v34  ;;  %v805_v41 = vpop.f32.mrf.mxu0 }
 0x39a   :  { %1314 = vpow2.f32 %v1235_v56 }
 0x39b   :  { %1316 = vpow2.f32 %v1236_v2 }
 0x39d   :  { %v779_v16 = vpop.f32.mrf.mxu2  ;;  %v792_v26 = vpop.f32.mrf.mxu3 }
 0x3a0   :  { %v1315_v38 = vpop.eup %1314 }
 0x3a1   :  { %v1317_v52 = vpop.eup %1316  ;;  %v812_v47 = vadd.f32 1.0, %v1315_v38 }
 0x3a2   :  { %v832_v61 = vadd.f32 1.0, %v1317_v52 }
 0x3a3   :  { %1318 = vrcp.f32 %v812_v47  ;;  %v824_v30 = vand.u32 2147483648, %v812_v47  ;;  %v822_v13 = vand.u32 2147483647, %v812_v47  ;;  %vm818_vm1 = vweird.f32 %v812_v47 }
 0x3a4   :  { %1320 = vrcp.f32 %v832_v61  ;;  %v844_v31 = vand.u32 2147483648, %v832_v61  ;;  %vm838_vm5 = vweird.f32 %v832_v61  ;;  %v842_v1 = vand.u32 2147483647, %v832_v61 }
 0x3a5   :  { %v825_v48 = vor.u32 1.1754944e-38, %v824_v30  ;;  %vm823_vm3 = vcmp.eq.f32.partialorder %v822_v13, 8.507059e+37 }
 0x3a6   :  { %v845_v63 = vor.u32 1.1754944e-38, %v844_v31  ;;  %vm843_vm7 = vcmp.eq.f32.partialorder %v842_v1, 8.507059e+37 }
 0x3a9   :  { %v1319_v10 = vpop.eup %1318 }
 0x3aa   :  { %v1321_v51 = vpop.eup %1320  ;;  %v814_v33 = vmul.f32 %v1319_v10, %v812_v47  ;;  %vm819_vm0 = vweird.f32 %v1319_v10 }
 0x3ab   :  { %v834_v46 = vmul.f32 %v1321_v51, %v832_v61  ;;  %vm820_vm2 = vmor %vm818_vm1, %vm819_vm0  ;;  %vm839_vm4 = vweird.f32 %v1321_v51 }
 0x3ac   :  { %v815_v6 = vsub.f32 1.0, %v814_v33  ;;  %vm840_vm6 = vmor %vm838_vm5, %vm839_vm4 }
 0x3ad   :  { %v835_v44 = vsub.f32 1.0, %v834_v46 }
 0x3ae   :  { %v816_v32 = vmul.f32 %v1319_v10, %v815_v6 }
 0x3af   :  { %v836_v23 = vmul.f32 %v1321_v51, %v835_v44 }
 0x3b0   :  { %v817_v53 = vadd.f32 %v1319_v10, %v816_v32 }
 0x3b1   :  { %v837_v25 = vadd.f32 %v1321_v51, %v836_v23 }
 0x3b2   :  { %v821_v21 = vsel %vm820_vm2, %v1319_v10, %v817_v53 }
 0x3b3   :  { %v826_v45 = vsel %vm823_vm3, %v825_v48, %v821_v21  ;;  %v841_v3 = vsel %vm840_vm6, %v1321_v51, %v837_v25  ;;  %v204_v21 = vadd.f32 %v1739_v58, %v1660_v43 }
 0x3b4   :  { %v848_v0 = vmul.f32 %v826_v45, %v807_v39  ;;  %v846_v36 = vsel %vm843_vm7, %v845_v63, %v841_v3 }
 0x3b6   :  { %v849_v8 = vadd.f32 %v848_v0, %v1691_v22 }
 0x3b8   :  { %1322 = vtanh.f32 %v849_v8 }
 0x3be   :  { %v1323_v20 = vpop.eup %1322 }
 0x3bf   :  { %v851_v24 = vsub.f32 %v1826_v50, %v1323_v20 }
 0x3c1   :  { %v852_v59 = vmul.f32 %v851_v24, %v846_v36 }
 0x3c3   :  { %v1864_v37 = vadd.f32 %v1323_v20, %v852_v59 }
 0x3c5   :  { %854 = vst [vmem:[%s1917_s6 + $0x20] sm:$0xff] %v1864_v37  ;;  %v855_v22 = vpack.c.bf16 %v1864_v37, %v1864_v37 }
 0x3c7   :  { %864 = vmatmul.bf16.vlgmr.msra.gmra.mxu1 %v855_v22  ;;  %877 = vmatmul.bf16.vlgmr.msra.gmra.mxu2 %v855_v22 }
 0x3c8   :  { %890 = vmatmul.bf16.vlgmr.msrb.gmra.mxu3 %v855_v22  ;;  %1058 = vmatpush.bf16.msra.mxu1 %v1494_v57  ;;  %v201_v57 = vadd.f32 %v1737_v54, %v1660_v43 }
 0x3cc   :  { %1059 = vmatpush.bf16.msra.mxu1 %v1506_v5 }
 0x3d0   :  { %1060 = vmatpush.bf16.msra.mxu1 %v1518_v18 }
 0x3d4   :  { %1061 = vmatpush.bf16.msra.mxu1 %v1525_v29 }
 0x3d8   :  { %1062 = vmatpush.bf16.msra.mxu1 %v1536_v40 }
 0x3dc   :  { %1063 = vmatpush.bf16.msra.mxu1 %v1545_v49 }
 0x3e0   :  { %1064 = vmatpush.bf16.msra.mxu1 %v1557_v62 }
 0x3e4   :  { %1065 = vmatpush.bf16.msra.mxu1 %v1566_v12 }
 0x444   :  { %v865_v55 = vpop.f32.mrf.mxu1 }
 0x445   :  { %v896_v7 = vadd.f32 %v865_v55, %v1665_v60 }
 0x447   :  { %v1237_v15 = vmul.f32 -1.442695, %v896_v7 }
 0x449   :  { %1324 = vpow2.f32 %v1237_v15 }
 0x44a   :  { %v878_v5 = vpop.f32.mrf.mxu2 }
 0x44b   :  { %v916_v18 = vadd.f32 %v878_v5, %v201_v57  ;;  %v891_v50 = vpop.f32.mrf.mxu3 }
 0x44c   :  { %v867_v29 = vpop.f32.mrf.mxu1  ;;  %v895_v38 = vadd.f32 %v1679_v35, %v891_v50 }
 0x44d   :  { %v1238_v17 = vmul.f32 -1.442695, %v916_v18 }
 0x44f   :  { %v1325_v40 = vpop.eup %1324  ;;  %1326 = vpow2.f32 %v1238_v17 }
 0x450   :  { %v900_v49 = vadd.f32 1.0, %v1325_v40 }
 0x452   :  { %1328 = vrcp.f32 %v900_v49  ;;  %v880_v62 = vpop.f32.mrf.mxu2  ;;  %v912_v27 = vand.u32 2147483648, %v900_v49  ;;  %v910_v34 = vand.u32 2147483647, %v900_v49  ;;  %vm906_vm9 = vweird.f32 %v900_v49 }
 0x453   :  { %v893_v4 = vpop.f32.mrf.mxu3 }
 0x454   :  { %v913_v16 = vor.u32 1.1754944e-38, %v912_v27  ;;  %vm911_vm11 = vcmp.eq.f32.partialorder %v910_v34, 8.507059e+37 }
 0x455   :  { %v1327_v12 = vpop.eup %1326 }
 0x456   :  { %v920_v9 = vadd.f32 1.0, %v1327_v12 }
 0x458   :  { %v1329_v14 = vpop.eup %1328  ;;  %1330 = vrcp.f32 %v920_v9  ;;  %v932_v6 = vand.u32 2147483648, %v920_v9  ;;  %vm926_vm13 = vweird.f32 %v920_v9  ;;  %v930_v30 = vand.u32 2147483647, %v920_v9 }
 0x459   :  { %v902_v60 = vmul.f32 %v1329_v14, %v900_v49  ;;  %vm907_vm8 = vweird.f32 %v1329_v14 }
 0x45a   :  { %vm908_vm10 = vmor %vm906_vm9, %vm907_vm8  ;;  %v933_v13 = vor.u32 1.1754944e-38, %v932_v6  ;;  %vm931_vm15 = vcmp.eq.f32.partialorder %v930_v30, 8.507059e+37 }
 0x45b   :  { %v903_v19 = vsub.f32 1.0, %v902_v60 }
 0x45d   :  { %v904_v54 = vmul.f32 %v1329_v14, %v903_v19 }
 0x45e   :  { %v1331_v56 = vpop.eup %1330 }
 0x45f   :  { %v922_v2 = vmul.f32 %v1331_v56, %v920_v9  ;;  %v905_v41 = vadd.f32 %v1329_v14, %v904_v54  ;;  %vm927_vm12 = vweird.f32 %v1331_v56 }
 0x460   :  { %vm928_vm14 = vmor %vm926_vm13, %vm927_vm12 }
 0x461   :  { %v923_v26 = vsub.f32 1.0, %v922_v2  ;;  %v909_v52 = vsel %vm908_vm10, %v1329_v14, %v905_v41  ;;  %v1924_v41 = vld [vmem:[#allocation11_spill] sm:$0xff] }
 0x462   :  { %v914_v47 = vsel %vm911_vm11, %v913_v16, %v909_v52  ;;  %v207_v16 = vadd.f32 %v1924_v41, %v1660_v43 }
 0x463   :  { %v936_v61 = vmul.f32 %v914_v47, %v895_v38  ;;  %v924_v10 = vmul.f32 %v1331_v56, %v923_v26 }
 0x465   :  { %v937_v51 = vadd.f32 %v936_v61, %v1703_v28  ;;  %v925_v33 = vadd.f32 %v1331_v56, %v924_v10  ;;  %v1925_v10 = vld [vmem:[#allocation10_spill] sm:$0xff] }
 0x467   :  { %1332 = vtanh.f32 %v937_v51  ;;  %v929_v46 = vsel %vm928_vm14, %v1331_v56, %v925_v33 }
 0x468   :  { %v934_v48 = vsel %vm931_vm15, %v933_v13, %v929_v46 }
 0x46d   :  { %v1333_v32 = vpop.eup %1332 }
 0x46e   :  { %v939_v53 = vsub.f32 %v1864_v37, %v1333_v32 }
 0x470   :  { %v940_v44 = vmul.f32 %v939_v53, %v934_v48 }
 0x472   :  { %v941_v39 = vadd.f32 %v1333_v32, %v940_v44 }
 0x474   :  { %942 = vst [vmem:[%s1917_s6 + $0x28] sm:$0xff] %v941_v39  ;;  %v943_v28 = vpack.c.bf16 %v941_v39, %v941_v39 }
 0x476   :  { %952 = vmatmul.bf16.vlgmr.msrb.gmra.mxu0 %v943_v28  ;;  %965 = vmatmul.bf16.vlgmr.msrb.gmra.mxu1 %v943_v28 }
 0x477   :  { %978 = vmatmul.bf16.vlgmr.msrb.gmra.mxu2 %v943_v28 }
 0x4f3   :  { %v953_v45 = vpop.f32.mrf.mxu0  ;;  %v966_v0 = vpop.f32.mrf.mxu1 }
 0x4f4   :  { %v984_v23 = vadd.f32 %v953_v45, %v1667_v11  ;;  %v1004_v8 = vadd.f32 %v966_v0, %v204_v21 }
 0x4f6   :  { %v1239_v25 = vmul.f32 -1.442695, %v984_v23  ;;  %v1240_v31 = vmul.f32 -1.442695, %v1004_v8 }
 0x4f8   :  { %1334 = vpow2.f32 %v1239_v25 }
 0x4f9   :  { %1336 = vpow2.f32 %v1240_v31 }
 0x4fa   :  { %v979_v1 = vpop.f32.mrf.mxu2 }
 0x4fb   :  { %v955_v3 = vpop.f32.mrf.mxu0  ;;  %v968_v20 = vpop.f32.mrf.mxu1  ;;  %v983_v17 = vadd.f32 %v1679_v35, %v979_v1  ;;  %v1354_v1 = vld [vmem:[%s1916_s5] ss:$0 sm:$0xff] }
 0x4fe   :  { %v1335_v63 = vpop.eup %1334 }
 0x4ff   :  { %v1337_v24 = vpop.eup %1336  ;;  %v988_v36 = vadd.f32 1.0, %v1335_v63 }
 0x500   :  { %v1008_v59 = vadd.f32 1.0, %v1337_v24  ;;  %v1926_v24 = vld [vmem:[#allocation9_spill] sm:$0xff] }
 0x501   :  { %1338 = vrcp.f32 %v988_v36  ;;  %v1000_v15 = vand.u32 2147483648, %v988_v36  ;;  %v998_v5 = vand.u32 2147483647, %v988_v36  ;;  %vm994_vm1 = vweird.f32 %v988_v36 }
 0x502   :  { %1340 = vrcp.f32 %v1008_v59  ;;  %v981_v37 = vpop.f32.mrf.mxu2  ;;  %v1020_v14 = vand.u32 2147483648, %v1008_v59  ;;  %vm1014_vm5 = vweird.f32 %v1008_v59  ;;  %v1018_v60 = vand.u32 2147483647, %v1008_v59 }
 0x503   :  { %v1001_v29 = vor.u32 1.1754944e-38, %v1000_v15  ;;  %vm999_vm3 = vcmp.eq.f32.partialorder %v998_v5, 8.507059e+37 }
 0x504   :  { %v1021_v54 = vor.u32 1.1754944e-38, %v1020_v14  ;;  %vm1019_vm7 = vcmp.eq.f32.partialorder %v1018_v60, 8.507059e+37 }
 0x507   :  { %v1339_v58 = vpop.eup %1338 }
 0x508   :  { %v1341_v22 = vpop.eup %1340  ;;  %v990_v55 = vmul.f32 %v1339_v58, %v988_v36  ;;  %vm995_vm0 = vweird.f32 %v1339_v58  ;;  %v1927_v36 = vld [vmem:[#allocation12_spill] sm:$0xff] }
 0x509   :  { %v1010_v11 = vmul.f32 %v1341_v22, %v1008_v59  ;;  %vm996_vm2 = vmor %vm994_vm1, %vm995_vm0  ;;  %vm1015_vm4 = vweird.f32 %v1341_v22  ;;  %v248_v59 = vadd.f32 %v1927_v36, %v1926_v24 }
 0x50a   :  { %v991_v7 = vsub.f32 1.0, %v990_v55  ;;  %vm1016_vm6 = vmor %vm1014_vm5, %vm1015_vm4 }
 0x50b   :  { %v1011_v50 = vsub.f32 1.0, %v1010_v11 }
 0x50c   :  { %v992_v57 = vmul.f32 %v1339_v58, %v991_v7 }
 0x50d   :  { %v1012_v4 = vmul.f32 %v1341_v22, %v1011_v50 }
 0x50e   :  { %v993_v18 = vadd.f32 %v1339_v58, %v992_v57 }
 0x50f   :  { %v1013_v9 = vadd.f32 %v1341_v22, %v1012_v4 }
 0x510   :  { %v997_v40 = vsel %vm996_vm2, %v1339_v58, %v993_v18 }
 0x511   :  { %v1002_v49 = vsel %vm999_vm3, %v1001_v29, %v997_v40  ;;  %v1017_v19 = vsel %vm1016_vm6, %v1341_v22, %v1013_v9 }
 0x512   :  { %v1024_v62 = vmul.f32 %v1002_v49, %v983_v17  ;;  %v1022_v35 = vsel %vm1019_vm7, %v1021_v54, %v1017_v19 }
 0x514   :  { %v1025_v12 = vadd.f32 %v1024_v62, %v1712_v42 }
 0x516   :  { %1342 = vtanh.f32 %v1025_v12 }
 0x51c   :  { %v1343_v27 = vpop.eup %1342 }
 0x51d   :  { %v1027_v34 = vsub.f32 %v941_v39, %v1343_v27 }
 0x51f   :  { %v1028_v56 = vmul.f32 %v1027_v34, %v1022_v35 }
 0x521   :  { %v1029_v2 = vadd.f32 %v1343_v27, %v1028_v56 }
 0x523   :  { %1030 = vst [vmem:[%s1917_s6 + $0x30] sm:$0xff] %v1029_v2  ;;  %v1031_v42 = vpack.c.bf16 %v1029_v2, %v1029_v2 }
 0x525   :  { %1040 = vmatmul.bf16.vlgmr.msra.gmra.mxu3 %v1031_v42  ;;  %1053 = vmatmul.bf16.vlgmr.msra.gmra.mxu0 %v1031_v42 }
 0x526   :  { %1066 = vmatmul.bf16.vlgmr.msra.gmra.mxu1 %v1031_v42 }
 0x5a2   :  { %v1054_v26 = vpop.f32.mrf.mxu0 }
 0x5a3   :  { %v1092_v38 = vadd.f32 %v1054_v26, %v207_v16  ;;  %v1067_v52 = vpop.f32.mrf.mxu1 }
 0x5a4   :  { %v1071_v3 = vadd.f32 %v1354_v1, %v1067_v52 }
 0x5a5   :  { %v1242_v47 = vmul.f32 -1.442695, %v1092_v38 }
 0x5a7   :  { %1344 = vpow2.f32 %v1242_v47 }
 0x5a8   :  { %v1041_v61 = vpop.f32.mrf.mxu3 }
 0x5a9   :  { %v1072_v51 = vadd.f32 %v1041_v61, %v1925_v10 }
 0x5aa   :  { %v1056_v33 = vpop.f32.mrf.mxu0 }
 0x5ab   :  { %v1241_v6 = vmul.f32 -1.442695, %v1072_v51  ;;  %v1069_v30 = vpop.f32.mrf.mxu1 }
 0x5ad   :  { %1346 = vpow2.f32 %v1241_v6  ;;  %v1345_v46 = vpop.eup %1344 }
 0x5ae   :  { %v1096_v53 = vadd.f32 1.0, %v1345_v46 }
 0x5b0   :  { %v1043_v32 = vpop.f32.mrf.mxu3  ;;  %v1108_v7 = vand.u32 2147483648, %v1096_v53  ;;  %vm1102_vm13 = vweird.f32 %v1096_v53  ;;  %v1106_v11 = vand.u32 2147483647, %v1096_v53 }
 0x5b2   :  { %v1109_v5 = vor.u32 1.1754944e-38, %v1108_v7  ;;  %vm1107_vm15 = vcmp.eq.f32.partialorder %v1106_v11, 8.507059e+37 }
 0x5b3   :  { %v1347_v13 = vpop.eup %1346 }
 0x5b4   :  { %v1076_v48 = vadd.f32 1.0, %v1347_v13 }
 0x5b6   :  { %1348 = vrcp.f32 %v1076_v48  ;;  %v1088_v45 = vand.u32 2147483648, %v1076_v48  ;;  %v1086_v23 = vand.u32 2147483647, %v1076_v48  ;;  %vm1082_vm9 = vweird.f32 %v1076_v48 }
 0x5b7   :  { %1350 = vrcp.f32 %v1096_v53 }
 0x5b8   :  { %v1089_v31 = vor.u32 1.1754944e-38, %v1088_v45  ;;  %vm1087_vm11 = vcmp.eq.f32.partialorder %v1086_v23, 8.507059e+37 }
 0x5bc   :  { %v1349_v43 = vpop.eup %1348 }
 0x5bd   :  { %v1351_v44 = vpop.eup %1350  ;;  %v1078_v39 = vmul.f32 %v1349_v43, %v1076_v48  ;;  %vm1083_vm8 = vweird.f32 %v1349_v43 }
 0x5be   :  { %v1098_v21 = vmul.f32 %v1351_v44, %v1096_v53  ;;  %vm1084_vm10 = vmor %vm1082_vm9, %vm1083_vm8  ;;  %vm1103_vm12 = vweird.f32 %v1351_v44 }
 0x5bf   :  { %v1079_v28 = vsub.f32 1.0, %v1078_v39  ;;  %vm1104_vm14 = vmor %vm1102_vm13, %vm1103_vm12 }
 0x5c0   :  { %v1099_v25 = vsub.f32 1.0, %v1098_v21 }
 0x5c1   :  { %v1080_v0 = vmul.f32 %v1349_v43, %v1079_v28 }
 0x5c2   :  { %v1100_v58 = vmul.f32 %v1351_v44, %v1099_v25 }
 0x5c3   :  { %v1081_v8 = vadd.f32 %v1349_v43, %v1080_v0 }
 0x5c4   :  { %v1101_v55 = vadd.f32 %v1351_v44, %v1100_v58 }
 0x5c5   :  { %v1085_v20 = vsel %vm1084_vm10, %v1349_v43, %v1081_v8 }
 0x5c6   :  { %v1090_v63 = vsel %vm1087_vm11, %v1089_v31, %v1085_v20  ;;  %v1105_v15 = vsel %vm1104_vm14, %v1351_v44, %v1101_v55 }
 0x5c7   :  { %v1112_v37 = vmul.f32 %v1090_v63, %v1071_v3  ;;  %v1110_v50 = vsel %vm1107_vm15, %v1109_v5, %v1105_v15 }
 0x5c9   :  { %v1113_v22 = vadd.f32 %v1112_v37, %v248_v59 }
 0x5cb   :  { %1352 = vtanh.f32 %v1113_v22 }
 0x5d1   :  { %v1353_v57 = vpop.eup %1352 }
 0x5d2   :  { %v1115_v18 = vsub.f32 %v1029_v2, %v1353_v57 }
 0x5d4   :  { %v1116_v29 = vmul.f32 %v1115_v18, %v1110_v50 }
 0x5d6   :  { %v1117_v17 = vadd.f32 %v1353_v57, %v1116_v29 }
 0x5d8   :  { %1118 = vst [vmem:[%s1917_s6 + $0x38] sm:$0xff] %v1117_v17 }
 0x5d9   :  { %1120 = vst [vmem:[%s1918_s7] sm:$0xff] %v1117_v17 }
 0x5da   :  { %1129 = vsyncpa [#allocation4], 1 }
 0x5db   :  { %1130 = vsyncpa [#allocation6], 1 }

</bundles_post_ra>
